<compile_context>
chip_gen: v7x
topology: tpu7x:2x2x1
jax: 0.10.0
libtpu: 0.0.40
codegen_flags: <defaults>
</compile_context>

<pallas_src>
import functools
import math

import jax
import jax.numpy as jnp
from jax.experimental import pallas as pl
from jax.experimental.pallas import tpu as pltpu


_VMEM_LIMIT = 32 * 1024 * 1024     # explicit, safe on v5e / v6e / v7x
_EPS = 1e-12                       # HF Reformer layer_norm_eps


# ------------------------------ tiling helpers -------------------------------

def _round_up(x, m):
    return ((x + m - 1) // m) * m


def _pick_tile(dim, desired, align):
    """Largest tile <= desired that divides `dim` and is a multiple of `align`.
    Falls back to the full dim only for small shapes; lane-critical dims such
    as the vocab are padded to a multiple of 256 at init so the fallback never
    produces a huge block at real sizes."""
    if dim <= desired:
        return dim
    t = (desired // align) * align
    while t >= align:
        if dim % t == 0:
            return t
        t -= align
    return dim


# ----------------------- tiled linear (+bias/relu/residual) ------------------

def _make_linear_kernel(has_bias, has_res, relu):
    def kernel(*refs):
        x_ref, w_ref = refs[0], refs[1]
        idx = 2
        b_ref = None
        r_ref = None
        if has_bias:
            b_ref = refs[idx]; idx += 1
        if has_res:
            r_ref = refs[idx]; idx += 1
        o_ref = refs[idx]
        acc_ref = refs[idx + 1]

        k = pl.program_id(2)

        @pl.when(k == 0)
        def _():
            acc_ref[...] = jnp.zeros_like(acc_ref)

        x = x_ref[...]
        w = w_ref[...]
        if x.dtype != jnp.bfloat16:
            x = x.astype(jnp.bfloat16)
        if w.dtype != jnp.bfloat16:
            w = w.astype(jnp.bfloat16)
        acc_ref[...] += jnp.dot(x, w, preferred_element_type=jnp.float32)

        @pl.when(k == pl.num_programs(2) - 1)
        def _():
            out = acc_ref[...]
            if has_bias:
                out = out + b_ref[...].astype(jnp.float32)
            if relu:
                out = jnp.maximum(out, 0.0)
            if has_res:
                out = out + r_ref[...].astype(jnp.float32)
            o_ref[...] = out.astype(o_ref.dtype)

    return kernel


def linear(x, w, b=None, residual=None, relu=False, out_dtype=jnp.bfloat16,
           tm=256, tn=512, tk=512):
    """(M,K) @ (K,N) [+ bias] [relu] [+ residual]; grid tiled, bf16 MXU / f32 acc."""
    M, K = x.shape
    _, N = w.shape
    tm = _pick_tile(M, tm, 8)
    tn = _pick_tile(N, tn, 128)
    tk = _pick_tile(K, tk, 128)
    grid = (M // tm, N // tn, K // tk)

    in_specs = [
        pl.BlockSpec((tm, tk), lambda i, j, k: (i, k)),
        pl.BlockSpec((tk, tn), lambda i, j, k: (k, j)),
    ]
    args = [x, w]
    if b is not None:
        in_specs.append(pl.BlockSpec((1, tn), lambda i, j, k: (0, j)))
        args.append(b.reshape(1, N))
    if residual is not None:
        in_specs.append(pl.BlockSpec((tm, tn), lambda i, j, k: (i, j)))
        args.append(residual)

    kern = _make_linear_kernel(b is not None, residual is not None, relu)
    bytes_acc = int(x.size * x.dtype.itemsize + w.size * w.dtype.itemsize
                    + M * N * jnp.dtype(out_dtype).itemsize)
    return pl.pallas_call(
        kern,
        out_shape=jax.ShapeDtypeStruct((M, N), out_dtype),
        grid=grid,
        in_specs=in_specs,
        out_specs=pl.BlockSpec((tm, tn), lambda i, j, k: (i, j)),
        scratch_shapes=[pltpu.VMEM((tm, tn), jnp.float32)],
        compiler_params=pltpu.CompilerParams(
            dimension_semantics=("parallel", "parallel", "arbitrary"),
            vmem_limit_bytes=_VMEM_LIMIT),
        cost_estimate=pl.CostEstimate(flops=2 * M * N * K, transcendentals=0,
                                      bytes_accessed=bytes_acc),
    )(*args)


# ------------------- fused pre-LayerNorm + linear (K untiled) ----------------

def _make_ln_linear_kernel(has_bias, relu, eps):
    def kernel(*refs):
        x_ref, g_ref, beta_ref, w_ref = refs[:4]
        idx = 4
        b_ref = None
        if has_bias:
            b_ref = refs[idx]; idx += 1
        o_ref = refs[idx]

        x = x_ref[...].astype(jnp.float32)
        mean = jnp.mean(x, axis=-1, keepdims=True)
        var = jnp.mean(jnp.square(x - mean), axis=-1, keepdims=True)
        xn = (x - mean) * jax.lax.rsqrt(var + eps)
        xn = xn * g_ref[...] + beta_ref[...]
        acc = jnp.dot(xn.astype(jnp.bfloat16), w_ref[...],
                      preferred_element_type=jnp.float32)
        if has_bias:
            acc = acc + b_ref[...].astype(jnp.float32)
        if relu:
            acc = jnp.maximum(acc, 0.0)
        o_ref[...] = acc.astype(o_ref.dtype)

    return kernel


def ln_linear(x, g, beta, w, b=None, relu=False, out_dtype=jnp.bfloat16,
              eps=_EPS, tm=256, tn=512):
    """LayerNorm(x) @ w [+ bias] [relu] fused in one kernel (K = hidden, untiled)."""
    M, K = x.shape
    _, N = w.shape
    tm = _pick_tile(M, tm, 8)
    tn = _pick_tile(N, tn, 128)
    grid = (M // tm, N // tn)

    in_specs = [
        pl.BlockSpec((tm, K), lambda i, j: (i, 0)),
        pl.BlockSpec((1, K), lambda i, j: (0, 0)),
        pl.BlockSpec((1, K), lambda i, j: (0, 0)),
        pl.BlockSpec((K, tn), lambda i, j: (0, j)),
    ]
    args = [x, g.reshape(1, K), beta.reshape(1, K), w]
    if b is not None:
        in_specs.append(pl.BlockSpec((1, tn), lambda i, j: (0, j)))
        args.append(b.reshape(1, N))

    kern = _make_ln_linear_kernel(b is not None, relu, eps)
    bytes_acc = int(x.size * x.dtype.itemsize + w.size * w.dtype.itemsize
                    + M * N * jnp.dtype(out_dtype).itemsize)
    return pl.pallas_call(
        kern,
        out_shape=jax.ShapeDtypeStruct((M, N), out_dtype),
        grid=grid,
        in_specs=in_specs,
        out_specs=pl.BlockSpec((tm, tn), lambda i, j: (i, j)),
        compiler_params=pltpu.CompilerParams(
            dimension_semantics=("parallel", "parallel"),
            vmem_limit_bytes=_VMEM_LIMIT),
        cost_estimate=pl.CostEstimate(flops=2 * M * N * K, transcendentals=0,
                                      bytes_accessed=bytes_acc),
    )(*args)


# -------------------------- flash-style attention ----------------------------

def _flash_kernel(q_ref, kt_ref, v_ref, mask_ref, o_ref, m_sc, l_sc, acc_sc):
    ki = pl.program_id(3)

    @pl.when(ki == 0)
    def _():
        m_sc[...] = jnp.full_like(m_sc, -jnp.inf)
        l_sc[...] = jnp.zeros_like(l_sc)
        acc_sc[...] = jnp.zeros_like(acc_sc)

    q = q_ref[0, 0]            # (tq, D)  bf16   (1/sqrt(D) already folded in)
    kt = kt_ref[0, 0]          # (D, tk)  bf16   (pre-transposed: no XLU vxpose)
    v = v_ref[0, 0]            # (tk, D)  bf16

    s = jnp.dot(q, kt, preferred_element_type=jnp.float32)       # (tq, tk)
    s = s + mask_ref[0]                                           # additive key mask

    m_prev = m_sc[...]
    m_new = jnp.maximum(m_prev, jnp.max(s, axis=-1, keepdims=True))
    alpha = jnp.exp(m_prev - m_new)
    p = jnp.exp(s - m_new)
    l_sc[...] = alpha * l_sc[...] + jnp.sum(p, axis=-1, keepdims=True)
    acc_sc[...] = alpha * acc_sc[...] + jnp.dot(p.astype(v.dtype), v,
                                                preferred_element_type=jnp.float32)
    m_sc[...] = m_new

    @pl.when(ki == pl.num_programs(3) - 1)
    def _():
        o_ref[0, 0] = (acc_sc[...] *
                       pl.reciprocal(l_sc[...], approx=True)).astype(o_ref.dtype)


def flash_attention(q, kt, v, mask_add, out_dtype=jnp.bfloat16, tq=256, tk=256):
    """q,v: (B, NH, S, D); kt: (B, NH, D, S); mask_add: (B, 1, S) additive.
    Returns (B, NH, S, D) = softmax(q kt + mask) v, kv-tiled (online softmax)."""
    # TODO(synk): LSH hashing/bucketing of ReformerAttention not implemented;
    # this is exact full attention, flash-tiled over the key axis.
    B, NH, S, D = q.shape
    tq = _pick_tile(S, tq, 8)
    tk = _pick_tile(S, tk, 128)
    grid = (B, NH, S // tq, S // tk)

    bytes_acc = int((q.size + kt.size + v.size) * q.dtype.itemsize
                    + mask_add.size * 4 + B * NH * S * D * jnp.dtype(out_dtype).itemsize)
    return pl.pallas_call(
        _flash_kernel,
        out_shape=jax.ShapeDtypeStruct((B, NH, S, D), out_dtype),
        grid=grid,
        in_specs=[
            pl.BlockSpec((1, 1, tq, D), lambda b, h, qi, ki: (b, h, qi, 0)),
            pl.BlockSpec((1, 1, D, tk), lambda b, h, qi, ki: (b, h, 0, ki)),
            pl.BlockSpec((1, 1, tk, D), lambda b, h, qi, ki: (b, h, ki, 0)),
            pl.BlockSpec((1, 1, tk), lambda b, h, qi, ki: (b, 0, ki)),
        ],
        out_specs=pl.BlockSpec((1, 1, tq, D), lambda b, h, qi, ki: (b, h, qi, 0)),
        scratch_shapes=[pltpu.VMEM((tq, 1), jnp.float32),
                        pltpu.VMEM((tq, 1), jnp.float32),
                        pltpu.VMEM((tq, D), jnp.float32)],
        compiler_params=pltpu.CompilerParams(
            dimension_semantics=("parallel", "parallel", "parallel", "arbitrary"),
            vmem_limit_bytes=_VMEM_LIMIT),
        cost_estimate=pl.CostEstimate(flops=4 * B * NH * S * S * D,
                                      transcendentals=B * NH * S * S,
                                      bytes_accessed=bytes_acc),
    )(q, kt, v, mask_add)


# ----------------- fused concat + final LayerNorm + LM head ------------------

def _final_kernel(a_ref, h_ref, ga_ref, gh_ref, ba_ref, bh_ref,
                  wa_ref, wh_ref, b_ref, o_ref, an_sc, hn_sc, *, eps):
    j = pl.program_id(1)

    # LayerNorm over concat([attn, hidden]) computed once per row tile (j == 0),
    # cached in bf16 VMEM scratch and reused across all vocab tiles.
    @pl.when(j == 0)
    def _():
        a = a_ref[...].astype(jnp.float32)
        h = h_ref[...].astype(jnp.float32)
        width = a.shape[1] + h.shape[1]
        mean = (jnp.sum(a, axis=-1, keepdims=True)
                + jnp.sum(h, axis=-1, keepdims=True)) / width
        var = (jnp.sum(jnp.square(a - mean), axis=-1, keepdims=True)
               + jnp.sum(jnp.square(h - mean), axis=-1, keepdims=True)) / width
        inv = jax.lax.rsqrt(var + eps)
        an_sc[...] = ((a - mean) * inv * ga_ref[...] + ba_ref[...]).astype(jnp.bfloat16)
        hn_sc[...] = ((h - mean) * inv * gh_ref[...] + bh_ref[...]).astype(jnp.bfloat16)

    acc = jnp.dot(an_sc[...], wa_ref[...], preferred_element_type=jnp.float32)
    acc = acc + jnp.dot(hn_sc[...], wh_ref[...], preferred_element_type=jnp.float32)
    acc = acc + b_ref[...].astype(jnp.float32)
    o_ref[...] = acc.astype(o_ref.dtype)


def final_ln_lm_head(attn_out, hidden, g, beta, w_a, w_h, b,
                     eps=_EPS, tm=256, tn=512):
    """LayerNorm(concat([attn_out, hidden])) @ [w_a; w_h] + b, vocab-tiled."""
    M, H = attn_out.shape
    Vp = w_a.shape[1]                      # padded vocab (multiple of 256)
    tm = _pick_tile(M, tm, 8)
    tn = _pick_tile(Vp, tn, 128)
    grid = (M // tm, Vp // tn)
    g_a, g_h = g[:H].reshape(1, H), g[H:].reshape(1, H)
    b_a, b_h = beta[:H].reshape(1, H), beta[H:].reshape(1, H)

    bytes_acc = int(2 * M * H * attn_out.dtype.itemsize
                    + 2 * H * Vp * w_a.dtype.itemsize + M * Vp * 4)
    return pl.pallas_call(
        functools.partial(_final_kernel, eps=eps),
        out_shape=jax.ShapeDtypeStruct((M, Vp), jnp.float32),
        grid=grid,
        in_specs=[
            pl.BlockSpec((tm, H), lambda i, j: (i, 0)),   # attn stream
            pl.BlockSpec((tm, H), lambda i, j: (i, 0)),   # hidden stream
            pl.BlockSpec((1, H), lambda i, j: (0, 0)),    # gamma (attn half)
            pl.BlockSpec((1, H), lambda i, j: (0, 0)),    # gamma (hidden half)
            pl.BlockSpec((1, H), lambda i, j: (0, 0)),    # beta (attn half)
            pl.BlockSpec((1, H), lambda i, j: (0, 0)),    # beta (hidden half)
            pl.BlockSpec((H, tn), lambda i, j: (0, j)),   # lm_w[:H]
            pl.BlockSpec((H, tn), lambda i, j: (0, j)),   # lm_w[H:]
            pl.BlockSpec((1, tn), lambda i, j: (0, j)),   # lm bias
        ],
        out_specs=pl.BlockSpec((tm, tn), lambda i, j: (i, j)),
        scratch_shapes=[pltpu.VMEM((tm, H), jnp.bfloat16),
                        pltpu.VMEM((tm, H), jnp.bfloat16)],
        compiler_params=pltpu.CompilerParams(
            dimension_semantics=("parallel", "arbitrary"),
            vmem_limit_bytes=_VMEM_LIMIT),
        cost_estimate=pl.CostEstimate(flops=4 * M * Vp * H, transcendentals=0,
                                      bytes_accessed=bytes_acc),
    )(attn_out, hidden, g_a, g_h, b_a, b_h, w_a, w_h, b.reshape(1, Vp))


# --------------------------- parameters & forward ----------------------------

def init_params(key, vocab, hidden, num_heads, head_dim, ffn, num_layers, max_pos):
    """MXU-facing weights stored bf16; LN params / biases / embeddings f32.
    Vocab padded to a multiple of 256 (lane-dense LM head, safe vocab tiling)."""
    def nrm(k, shape, dtype):
        return (0.02 * jax.random.normal(k, shape)).astype(dtype)

    vocab_pad = _round_up(vocab, 256)
    keys = jax.random.split(key, 4 + 8 * num_layers)
    ki = iter(range(len(keys)))
    all_head = num_heads * head_dim

    lm_w = jnp.zeros((2 * hidden, vocab_pad), jnp.bfloat16)
    lm_w = lm_w.at[:, :vocab].set(nrm(keys[next(ki)], (2 * hidden, vocab), jnp.bfloat16))
    params = {
        "word_emb": nrm(keys[next(ki)], (vocab, hidden), jnp.float32),  # "pretrained"
        "pos_emb": nrm(keys[next(ki)], (max_pos, hidden), jnp.float32),
        "ln_f_g": jnp.ones((2 * hidden,), jnp.float32),
        "ln_f_b": jnp.zeros((2 * hidden,), jnp.float32),
        "lm_w_a": lm_w[:hidden],            # split once for the fused concat+LN+head
        "lm_w_h": lm_w[hidden:],
        "lm_b": jnp.zeros((vocab_pad,), jnp.float32),
        "layers": [],
    }
    inv_sqrt_d = 1.0 / math.sqrt(head_dim)
    for _ in range(num_layers):
        # 1/sqrt(head_dim) folded into the Q columns (zero runtime cost).
        wq = nrm(keys[next(ki)], (hidden, all_head), jnp.float32) * inv_sqrt_d
        wk = nrm(keys[next(ki)], (hidden, all_head), jnp.float32)
        wv = nrm(keys[next(ki)], (hidden, all_head), jnp.float32)
        lyr = {
            "ln_attn_g": jnp.ones((hidden,), jnp.float32),
            "ln_attn_b": jnp.zeros((hidden,), jnp.float32),
            "w_qkv": jnp.concatenate([wq, wk, wv], axis=1).astype(jnp.bfloat16),
            "wo": nrm(keys[next(ki)], (all_head, hidden), jnp.bfloat16),   # bias-free (HF)
            "ln_ffn_g": jnp.ones((hidden,), jnp.float32),
            "ln_ffn_b": jnp.zeros((hidden,), jnp.float32),
            "w1": nrm(keys[next(ki)], (hidden, ffn), jnp.bfloat16),
            "b1": jnp.zeros((ffn,), jnp.float32),
            "w2": nrm(keys[next(ki)], (ffn, hidden), jnp.bfloat16),
            "b2": jnp.zeros((hidden,), jnp.float32),
        }
        params["layers"].append(lyr)
    return params


def reformer_mlm_forward(params, input_ids, attention_mask=None, *,
                         num_heads, head_dim, vocab):
    """Eval-mode forward of ReformerWithCustomEmbeddings (labels=None -> logits)."""
    B, S = input_ids.shape
    H = params["pos_emb"].shape[1]
    NHD = num_heads * head_dim
    M = B * S
    if attention_mask is None:
        attention_mask = jnp.ones((B, S), jnp.float32)

    # Embeddings: word emb gather + learned position emb (left to XLA).
    # TODO(synk): axial position embeddings (AxialPositionEmbeddings) not implemented;
    # plain learned position embeddings are used instead.
    x = jnp.take(params["word_emb"], input_ids, axis=0) + params["pos_emb"][None, :S, :]

    # Additive key mask, computed once per forward (not per grid step).
    mask_add = ((1.0 - attention_mask.astype(jnp.float32)) * (-1e9)).reshape(B, 1, S)

    # Reversible-style encoder state: (attn_out, hidden) == chunk(cat([x, x]), 2).
    # Residual streams kept in bf16 (halves HBM traffic); f32 accumulation in-kernel.
    attn_out = x.reshape(M, H).astype(jnp.bfloat16)
    hidden = x.reshape(M, H).astype(jnp.bfloat16)

    for lyr in params["layers"]:
        # --- attention sub-block: fused pre-LN + packed QKV projection --------
        qkv = ln_linear(hidden, lyr["ln_attn_g"], lyr["ln_attn_b"], lyr["w_qkv"],
                        out_dtype=jnp.bfloat16)                     # (M, 3*NHD)
        qkv = qkv.reshape(B, S, 3, num_heads, head_dim)
        # head/seq layout changes left to XLA (cheap relative to the matmuls);
        # K is emitted D-major so the kernel's QK^T needs no transpose.
        q = jnp.transpose(qkv[:, :, 0], (0, 2, 1, 3))               # (B, NH, S, D)
        kt = jnp.transpose(qkv[:, :, 1], (0, 2, 3, 1))              # (B, NH, D, S)
        v = jnp.transpose(qkv[:, :, 2], (0, 2, 1, 3))               # (B, NH, S, D)
        ctx = flash_attention(q, kt, v, mask_add)                    # (B, NH, S, D)
        ctx = jnp.transpose(ctx, (0, 2, 1, 3)).reshape(M, NHD)
        # output projection with the residual add fused into the epilogue
        attn_out = linear(ctx, lyr["wo"], residual=attn_out, out_dtype=jnp.bfloat16)

        # --- feed-forward sub-block: fused pre-LN + up-proj (relu), down-proj --
        ff = ln_linear(attn_out, lyr["ln_ffn_g"], lyr["ln_ffn_b"], lyr["w1"],
                       b=lyr["b1"], relu=True, out_dtype=jnp.bfloat16)
        hidden = linear(ff, lyr["w2"], b=lyr["b2"], residual=hidden,
                        out_dtype=jnp.bfloat16)

    # Encoder output: fused concat of the two streams + final LN + LM head.
    # TODO(synk): masked-LM cross-entropy loss (labels path) not implemented;
    # logits are returned, matching labels=None.
    logits = final_ln_lm_head(attn_out, hidden, params["ln_f_g"], params["ln_f_b"],
                              params["lm_w_a"], params["lm_w_h"], params["lm_b"])
    return logits[:, :vocab].reshape(B, S, vocab)


# ----------------------------------- main ------------------------------------

if __name__ == "__main__":
    B, S = 2, 16            # batch, sequence length
    V, H = 96, 32           # vocab size, hidden size
    NH, D = 2, 16           # num heads, head dim  (NH * D == H)
    F, L = 64, 2            # feed-forward size, num layers

    params = init_params(jax.random.PRNGKey(0), V, H, NH, D, F, L, max_pos=S)
    input_ids = jax.random.randint(jax.random.PRNGKey(1), (B, S), 0, V, dtype=jnp.int32)
    attention_mask = jnp.ones((B, S), dtype=jnp.float32)

    fwd = jax.jit(functools.partial(reformer_mlm_forward,
                                    num_heads=NH, head_dim=D, vocab=V))
    logits = fwd(params, input_ids, attention_mask)
    jax.block_until_ready(logits)

    assert logits.shape == (B, S, V) and logits.dtype == jnp.float32
    assert bool(jnp.all(jnp.isfinite(logits)))
    print("KERNEL_OK")
</pallas_src>

<mosaic_0001>
module attributes {stable_mosaic.version = 11 : i64} {
  func.func @kernel(%arg0: i32, %arg1: i32, %arg2: memref<32x32xbf16, #tpu.memory_space<vmem>>, %arg3: memref<1x32xf32, #tpu.memory_space<vmem>>, %arg4: memref<1x32xf32, #tpu.memory_space<vmem>>, %arg5: memref<32x96xbf16, #tpu.memory_space<vmem>>, %arg6: memref<32x96xbf16, #tpu.memory_space<vmem>>) attributes {dimension_semantics = [#tpu.dimension_semantics<parallel>, #tpu.dimension_semantics<parallel>], iteration_bounds = array<i64: 1, 1>, scalar_prefetch = 0 : i64, scratch_operands = 0 : i64, tpu.core_type = #tpu.core_type<tc>, window_params = [{transform_indices = @transform_0, window_bounds = array<i64: 32, 32>}, {pipeline_mode = #tpu.pipeline_mode<synchronous>, transform_indices = @transform_1, window_bounds = array<i64: 1, 32>}, {pipeline_mode = #tpu.pipeline_mode<synchronous>, transform_indices = @transform_2, window_bounds = array<i64: 1, 32>}, {transform_indices = @transform_3, window_bounds = array<i64: 32, 96>}, {transform_indices = @transform_4, window_bounds = array<i64: 32, 96>}]} {
    %c0 = arith.constant 0 : index
    %c0_0 = arith.constant 0 : index
    %0 = vector.load %arg2[%c0, %c0_0] : memref<32x32xbf16, #tpu.memory_space<vmem>>, vector<32x32xbf16>
    %1 = arith.extf %0 : vector<32x32xbf16> to vector<32x32xf32>
    %cst = arith.constant dense<0.000000e+00> : vector<32xf32>
    %2 = vector.multi_reduction <add>, %1, %cst [1] : vector<32x32xf32> to vector<32xf32>
    %3 = vector.shape_cast %2 : vector<32xf32> to vector<32x1xf32>
    %cst_1 = arith.constant 3.200000e+01 : f32
    %4 = vector.broadcast %cst_1 : f32 to vector<32x1xf32>
    %5 = arith.divf %3, %4 : vector<32x1xf32>
    %6 = vector.broadcast %5 : vector<32x1xf32> to vector<32x32xf32>
    %7 = arith.subf %1, %6 : vector<32x32xf32>
    %8 = arith.mulf %7, %7 : vector<32x32xf32>
    %cst_2 = arith.constant dense<0.000000e+00> : vector<32xf32>
    %9 = vector.multi_reduction <add>, %8, %cst_2 [1] : vector<32x32xf32> to vector<32xf32>
    %10 = vector.shape_cast %9 : vector<32xf32> to vector<32x1xf32>
    %cst_3 = arith.constant 3.200000e+01 : f32
    %11 = vector.broadcast %cst_3 : f32 to vector<32x1xf32>
    %12 = arith.divf %10, %11 : vector<32x1xf32>
    %13 = vector.broadcast %5 : vector<32x1xf32> to vector<32x32xf32>
    %14 = arith.subf %1, %13 : vector<32x32xf32>
    %cst_4 = arith.constant 9.99999996E-13 : f32
    %15 = vector.broadcast %cst_4 : f32 to vector<32x1xf32>
    %16 = arith.addf %12, %15 : vector<32x1xf32>
    %17 = math.rsqrt %16 : vector<32x1xf32>
    %18 = vector.broadcast %17 : vector<32x1xf32> to vector<32x32xf32>
    %19 = arith.mulf %14, %18 : vector<32x32xf32>
    %c0_5 = arith.constant 0 : index
    %c0_6 = arith.constant 0 : index
    %20 = vector.load %arg3[%c0_5, %c0_6] : memref<1x32xf32, #tpu.memory_space<vmem>>, vector<1x32xf32>
    %21 = vector.broadcast %20 : vector<1x32xf32> to vector<32x32xf32>
    %22 = arith.mulf %19, %21 : vector<32x32xf32>
    %c0_7 = arith.constant 0 : index
    %c0_8 = arith.constant 0 : index
    %23 = vector.load %arg4[%c0_7, %c0_8] : memref<1x32xf32, #tpu.memory_space<vmem>>, vector<1x32xf32>
    %24 = vector.broadcast %23 : vector<1x32xf32> to vector<32x32xf32>
    %25 = arith.addf %22, %24 : vector<32x32xf32>
    %26 = arith.truncf %25 : vector<32x32xf32> to vector<32x32xbf16>
    %c0_9 = arith.constant 0 : index
    %c0_10 = arith.constant 0 : index
    %27 = vector.load %arg5[%c0_9, %c0_10] : memref<32x96xbf16, #tpu.memory_space<vmem>>, vector<32x96xbf16>
    %cst_11 = arith.constant dense<0.000000e+00> : vector<32x96xf32>
    %28 = tpu.matmul %26, %27, %cst_11 {dimension_numbers = #tpu.dot_dimension_numbers<[1], [0], [0], [1], [0, 0, 1, 1], [], []>} : vector<32x32xbf16>, vector<32x96xbf16>, vector<32x96xf32> -> vector<32x96xf32>
    %29 = arith.truncf %28 : vector<32x96xf32> to vector<32x96xbf16>
    %c0_12 = arith.constant 0 : index
    %c0_13 = arith.constant 0 : index
    %30 = vector.load %arg6[%c0_12, %c0_13] : memref<32x96xbf16, #tpu.memory_space<vmem>>, vector<32x96xbf16>
    tpu.vector_store %arg6[%c0_12, %c0_13], %29 {strides = array<i32>} : memref<32x96xbf16, #tpu.memory_space<vmem>>, vector<32x96xbf16>,
    return
  }
  func.func @transform_0(%arg0: i32, %arg1: i32) -> (i32, i32) {
    %c0_i32 = arith.constant 0 : i32
    %c0_i32_0 = arith.constant 0 : i32
    return %arg0, %c0_i32 : i32, i32
  }
  func.func @transform_1(%arg0: i32, %arg1: i32) -> (i32, i32) {
    %c0_i32 = arith.constant 0 : i32
    %c0_i32_0 = arith.constant 0 : i32
    %c0_i32_1 = arith.constant 0 : i32
    return %c0_i32, %c0_i32_0 : i32, i32
  }
  func.func @transform_2(%arg0: i32, %arg1: i32) -> (i32, i32) {
    %c0_i32 = arith.constant 0 : i32
    %c0_i32_0 = arith.constant 0 : i32
    %c0_i32_1 = arith.constant 0 : i32
    return %c0_i32, %c0_i32_0 : i32, i32
  }
  func.func @transform_3(%arg0: i32, %arg1: i32) -> (i32, i32) {
    %c0_i32 = arith.constant 0 : i32
    %c0_i32_0 = arith.constant 0 : i32
    return %c0_i32, %arg1 : i32, i32
  }
  func.func @transform_4(%arg0: i32, %arg1: i32) -> (i32, i32) {
    %c0_i32 = arith.constant 0 : i32
    return %arg0, %arg1 : i32, i32
  }
}

module attributes {stable_mosaic.version = 11 : i64} {
  func.func @_flash_kernel(%arg0: i32, %arg1: i32, %arg2: i32, %arg3: i32, %arg4: memref<1x1x16x16xbf16, #tpu.memory_space<vmem>>, %arg5: memref<1x1x16x16xbf16, #tpu.memory_space<vmem>>, %arg6: memref<1x1x16x16xbf16, #tpu.memory_space<vmem>>, %arg7: memref<1x1x16xf32, #tpu.memory_space<vmem>>, %arg8: memref<1x1x16x16xbf16, #tpu.memory_space<vmem>>, %arg9: memref<16x1xf32, #tpu.memory_space<vmem>>, %arg10: memref<16x1xf32, #tpu.memory_space<vmem>>, %arg11: memref<16x16xf32, #tpu.memory_space<vmem>>) attributes {dimension_semantics = [#tpu.dimension_semantics<parallel>, #tpu.dimension_semantics<parallel>, #tpu.dimension_semantics<parallel>, #tpu.dimension_semantics<arbitrary>], iteration_bounds = array<i64: 2, 2, 1, 1>, scalar_prefetch = 0 : i64, scratch_operands = 3 : i64, tpu.core_type = #tpu.core_type<tc>, window_params = [{transform_indices = @transform_0, window_bounds = array<i64: 1, 1, 16, 16>}, {transform_indices = @transform_1, window_bounds = array<i64: 1, 1, 16, 16>}, {transform_indices = @transform_2, window_bounds = array<i64: 1, 1, 16, 16>}, {transform_indices = @transform_3, window_bounds = array<i64: 1, 1, 16>}, {transform_indices = @transform_4, window_bounds = array<i64: 1, 1, 16, 16>}]} {
    %c0_i32 = arith.constant 0 : i32
    %0 = arith.cmpi eq, %arg3, %c0_i32 : i32
    %1 = arith.extui %0 : i1 to i32
    %c0_i32_0 = arith.constant 0 : i32
    %2 = arith.cmpi ne, %1, %c0_i32_0 : i32
    scf.if %2 {
      %cst_32 = arith.constant 0xFF800000 : f32
      %40 = vector.broadcast %cst_32 : f32 to vector<16x1xf32>
      %c0_33 = arith.constant 0 : index
      %c0_34 = arith.constant 0 : index
      %41 = vector.load %arg9[%c0_33, %c0_34] : memref<16x1xf32, #tpu.memory_space<vmem>>, vector<16x1xf32>
      tpu.vector_store %arg9[%c0_33, %c0_34], %40 {strides = array<i32>} : memref<16x1xf32, #tpu.memory_space<vmem>>, vector<16x1xf32>,
      %cst_35 = arith.constant 0.000000e+00 : f32
      %42 = vector.broadcast %cst_35 : f32 to vector<16x1xf32>
      %c0_36 = arith.constant 0 : index
      %c0_37 = arith.constant 0 : index
      %43 = vector.load %arg10[%c0_36, %c0_37] : memref<16x1xf32, #tpu.memory_space<vmem>>, vector<16x1xf32>
      tpu.vector_store %arg10[%c0_36, %c0_37], %42 {strides = array<i32>} : memref<16x1xf32, #tpu.memory_space<vmem>>, vector<16x1xf32>,
      %cst_38 = arith.constant 0.000000e+00 : f32
      %44 = vector.broadcast %cst_38 : f32 to vector<16x16xf32>
      %c0_39 = arith.constant 0 : index
      %c0_40 = arith.constant 0 : index
      %45 = vector.load %arg11[%c0_39, %c0_40] : memref<16x16xf32, #tpu.memory_space<vmem>>, vector<16x16xf32>
      tpu.vector_store %arg11[%c0_39, %c0_40], %44 {strides = array<i32>} : memref<16x16xf32, #tpu.memory_space<vmem>>, vector<16x16xf32>,
    } else {
    }
    %c0 = arith.constant 0 : index
    %c0_1 = arith.constant 0 : index
    %c0_2 = arith.constant 0 : index
    %c0_3 = arith.constant 0 : index
    %3 = vector.load %arg4[%c0, %c0_1, %c0_2, %c0_3] : memref<1x1x16x16xbf16, #tpu.memory_space<vmem>>, vector<1x1x16x16xbf16>
    %4 = vector.shape_cast %3 : vector<1x1x16x16xbf16> to vector<16x16xbf16>
    %c0_4 = arith.constant 0 : index
    %c0_5 = arith.constant 0 : index
    %c0_6 = arith.constant 0 : index
    %c0_7 = arith.constant 0 : index
    %5 = vector.load %arg5[%c0_4, %c0_5, %c0_6, %c0_7] : memref<1x1x16x16xbf16, #tpu.memory_space<vmem>>, vector<1x1x16x16xbf16>
    %6 = vector.shape_cast %5 : vector<1x1x16x16xbf16> to vector<16x16xbf16>
    %c0_8 = arith.constant 0 : index
    %c0_9 = arith.constant 0 : index
    %c0_10 = arith.constant 0 : index
    %c0_11 = arith.constant 0 : index
    %7 = vector.load %arg6[%c0_8, %c0_9, %c0_10, %c0_11] : memref<1x1x16x16xbf16, #tpu.memory_space<vmem>>, vector<1x1x16x16xbf16>
    %8 = vector.shape_cast %7 : vector<1x1x16x16xbf16> to vector<16x16xbf16>
    %cst = arith.constant dense<0.000000e+00> : vector<16x16xf32>
    %9 = tpu.matmul %4, %6, %cst {dimension_numbers = #tpu.dot_dimension_numbers<[1], [0], [0], [1], [0, 0, 1, 1], [], []>} : vector<16x16xbf16>, vector<16x16xbf16>, vector<16x16xf32> -> vector<16x16xf32>
    %c0_12 = arith.constant 0 : index
    %c0_13 = arith.constant 0 : index
    %c0_14 = arith.constant 0 : index
    %10 = vector.load %arg7[%c0_12, %c0_13, %c0_14] : memref<1x1x16xf32, #tpu.memory_space<vmem>>, vector<1x1x16xf32>
    %11 = vector.shape_cast %10 : vector<1x1x16xf32> to vector<1x16xf32>
    %12 = vector.broadcast %11 : vector<1x16xf32> to vector<16x16xf32>
    %13 = arith.addf %9, %12 : vector<16x16xf32>
    %c0_15 = arith.constant 0 : index
    %c0_16 = arith.constant 0 : index
    %14 = vector.load %arg9[%c0_15, %c0_16] : memref<16x1xf32, #tpu.memory_space<vmem>>, vector<16x1xf32>
    %cst_17 = arith.constant dense<0xFF800000> : vector<16xf32>
    %15 = vector.multi_reduction <maximumf>, %13, %cst_17 [1] : vector<16x16xf32> to vector<16xf32>
    %16 = vector.shape_cast %15 : vector<16xf32> to vector<16x1xf32>
    %17 = arith.maximumf %14, %16 : vector<16x1xf32>
    %18 = arith.subf %14, %17 : vector<16x1xf32>
    %19 = math.exp %18 : vector<16x1xf32>
    %20 = vector.broadcast %17 : vector<16x1xf32> to vector<16x16xf32>
    %21 = arith.subf %13, %20 : vector<16x16xf32>
    %22 = math.exp %21 : vector<16x16xf32>
    %c0_18 = arith.constant 0 : index
    %c0_19 = arith.constant 0 : index
    %23 = vector.load %arg10[%c0_18, %c0_19] : memref<16x1xf32, #tpu.memory_space<vmem>>, vector<16x1xf32>
    %24 = arith.mulf %19, %23 : vector<16x1xf32>
    %cst_20 = arith.constant dense<0.000000e+00> : vector<16xf32>
    %25 = vector.multi_reduction <add>, %22, %cst_20 [1] : vector<16x16xf32> to vector<16xf32>
    %26 = vector.shape_cast %25 : vector<16xf32> to vector<16x1xf32>
    %27 = arith.addf %24, %26 : vector<16x1xf32>
    %c0_21 = arith.constant 0 : index
    %c0_22 = arith.constant 0 : index
    %28 = vector.load %arg10[%c0_21, %c0_22] : memref<16x1xf32, #tpu.memory_space<vmem>>, vector<16x1xf32>
    tpu.vector_store %arg10[%c0_21, %c0_22], %27 {strides = array<i32>} : memref<16x1xf32, #tpu.memory_space<vmem>>, vector<16x1xf32>,
    %c0_23 = arith.constant 0 : index
    %c0_24 = arith.constant 0 : index
    %29 = vector.load %arg11[%c0_23, %c0_24] : memref<16x16xf32, #tpu.memory_space<vmem>>, vector<16x16xf32>
    %30 = vector.broadcast %19 : vector<16x1xf32> to vector<16x16xf32>
    %31 = arith.mulf %30, %29 : vector<16x16xf32>
    %32 = arith.truncf %22 : vector<16x16xf32> to vector<16x16xbf16>
    %cst_25 = arith.constant dense<0.000000e+00> : vector<16x16xf32>
    %33 = tpu.matmul %32, %8, %cst_25 {dimension_numbers = #tpu.dot_dimension_numbers<[1], [0], [0], [1], [0, 0, 1, 1], [], []>} : vector<16x16xbf16>, vector<16x16xbf16>, vector<16x16xf32> -> vector<16x16xf32>
    %34 = arith.addf %31, %33 : vector<16x16xf32>
    %c0_26 = arith.constant 0 : index
    %c0_27 = arith.constant 0 : index
    %35 = vector.load %arg11[%c0_26, %c0_27] : memref<16x16xf32, #tpu.memory_space<vmem>>, vector<16x16xf32>
    tpu.vector_store %arg11[%c0_26, %c0_27], %34 {strides = array<i32>} : memref<16x16xf32, #tpu.memory_space<vmem>>, vector<16x16xf32>,
    %c0_28 = arith.constant 0 : index
    %c0_29 = arith.constant 0 : index
    %36 = vector.load %arg9[%c0_28, %c0_29] : memref<16x1xf32, #tpu.memory_space<vmem>>, vector<16x1xf32>
    tpu.vector_store %arg9[%c0_28, %c0_29], %17 {strides = array<i32>} : memref<16x1xf32, #tpu.memory_space<vmem>>, vector<16x1xf32>,
    %c0_i32_30 = arith.constant 0 : i32
    %37 = arith.cmpi eq, %arg3, %c0_i32_30 : i32
    %38 = arith.extui %37 : i1 to i32
    %c0_i32_31 = arith.constant 0 : i32
    %39 = arith.cmpi ne, %38, %c0_i32_31 : i32
    scf.if %39 {
      %c0_32 = arith.constant 0 : index
      %c0_33 = arith.constant 0 : index
      %40 = vector.load %arg11[%c0_32, %c0_33] : memref<16x16xf32, #tpu.memory_space<vmem>>, vector<16x16xf32>
      %c0_34 = arith.constant 0 : index
      %c0_35 = arith.constant 0 : index
      %41 = vector.load %arg10[%c0_34, %c0_35] : memref<16x1xf32, #tpu.memory_space<vmem>>, vector<16x1xf32>
      %42 = tpu.reciprocal %41 {approx = true} : vector<16x1xf32> -> vector<16x1xf32>
      %43 = vector.broadcast %42 : vector<16x1xf32> to vector<16x16xf32>
      %44 = arith.mulf %40, %43 : vector<16x16xf32>
      %45 = arith.truncf %44 : vector<16x16xf32> to vector<16x16xbf16>
      %c0_36 = arith.constant 0 : index
      %c0_37 = arith.constant 0 : index
      %c0_38 = arith.constant 0 : index
      %c0_39 = arith.constant 0 : index
      %46 = vector.load %arg8[%c0_36, %c0_37, %c0_38, %c0_39] : memref<1x1x16x16xbf16, #tpu.memory_space<vmem>>, vector<1x1x16x16xbf16>
      %47 = vector.shape_cast %46 : vector<1x1x16x16xbf16> to vector<16x16xbf16>
      %48 = vector.shape_cast %45 : vector<16x16xbf16> to vector<1x1x16x16xbf16>
      tpu.vector_store %arg8[%c0_36, %c0_37, %c0_38, %c0_39], %48 {strides = array<i32>} : memref<1x1x16x16xbf16, #tpu.memory_space<vmem>>, vector<1x1x16x16xbf16>,
    } else {
    }
    return
  }
  func.func @transform_0(%arg0: i32, %arg1: i32, %arg2: i32, %arg3: i32) -> (i32, i32, i32, i32) {
    %c0_i32 = arith.constant 0 : i32
    %c0_i32_0 = arith.constant 0 : i32
    return %arg0, %arg1, %arg2, %c0_i32 : i32, i32, i32, i32
  }
  func.func @transform_1(%arg0: i32, %arg1: i32, %arg2: i32, %arg3: i32) -> (i32, i32, i32, i32) {
    %c0_i32 = arith.constant 0 : i32
    %c0_i32_0 = arith.constant 0 : i32
    return %arg0, %arg1, %c0_i32, %arg3 : i32, i32, i32, i32
  }
  func.func @transform_2(%arg0: i32, %arg1: i32, %arg2: i32, %arg3: i32) -> (i32, i32, i32, i32) {
    %c0_i32 = arith.constant 0 : i32
    %c0_i32_0 = arith.constant 0 : i32
    return %arg0, %arg1, %arg3, %c0_i32 : i32, i32, i32, i32
  }
  func.func @transform_3(%arg0: i32, %arg1: i32, %arg2: i32, %arg3: i32) -> (i32, i32, i32) {
    %c0_i32 = arith.constant 0 : i32
    %c0_i32_0 = arith.constant 0 : i32
    return %arg0, %c0_i32, %arg3 : i32, i32, i32
  }
  func.func @transform_4(%arg0: i32, %arg1: i32, %arg2: i32, %arg3: i32) -> (i32, i32, i32, i32) {
    %c0_i32 = arith.constant 0 : i32
    %c0_i32_0 = arith.constant 0 : i32
    return %arg0, %arg1, %arg2, %c0_i32 : i32, i32, i32, i32
  }
}

module attributes {stable_mosaic.version = 11 : i64} {
  func.func @kernel(%arg0: i32, %arg1: i32, %arg2: i32, %arg3: memref<32x32xbf16, #tpu.memory_space<vmem>>, %arg4: memref<32x32xbf16, #tpu.memory_space<vmem>>, %arg5: memref<32x32xbf16, #tpu.memory_space<vmem>>, %arg6: memref<32x32xbf16, #tpu.memory_space<vmem>>, %arg7: memref<32x32xf32, #tpu.memory_space<vmem>>) attributes {dimension_semantics = [#tpu.dimension_semantics<parallel>, #tpu.dimension_semantics<parallel>, #tpu.dimension_semantics<arbitrary>], iteration_bounds = array<i64: 1, 1, 1>, scalar_prefetch = 0 : i64, scratch_operands = 1 : i64, tpu.core_type = #tpu.core_type<tc>, window_params = [{transform_indices = @transform_0, window_bounds = array<i64: 32, 32>}, {transform_indices = @transform_1, window_bounds = array<i64: 32, 32>}, {transform_indices = @transform_2, window_bounds = array<i64: 32, 32>}, {transform_indices = @transform_3, window_bounds = array<i64: 32, 32>}]} {
    %c0_i32 = arith.constant 0 : i32
    %0 = arith.cmpi eq, %arg2, %c0_i32 : i32
    %1 = arith.extui %0 : i1 to i32
    %c0_i32_0 = arith.constant 0 : i32
    %2 = arith.cmpi ne, %1, %c0_i32_0 : i32
    scf.if %2 {
      %cst_10 = arith.constant 0.000000e+00 : f32
      %12 = vector.broadcast %cst_10 : f32 to vector<32x32xf32>
      %c0_11 = arith.constant 0 : index
      %c0_12 = arith.constant 0 : index
      %13 = vector.load %arg7[%c0_11, %c0_12] : memref<32x32xf32, #tpu.memory_space<vmem>>, vector<32x32xf32>
      tpu.vector_store %arg7[%c0_11, %c0_12], %12 {strides = array<i32>} : memref<32x32xf32, #tpu.memory_space<vmem>>, vector<32x32xf32>,
    } else {
    }
    %c0 = arith.constant 0 : index
    %c0_1 = arith.constant 0 : index
    %3 = vector.load %arg3[%c0, %c0_1] : memref<32x32xbf16, #tpu.memory_space<vmem>>, vector<32x32xbf16>
    %c0_2 = arith.constant 0 : index
    %c0_3 = arith.constant 0 : index
    %4 = vector.load %arg4[%c0_2, %c0_3] : memref<32x32xbf16, #tpu.memory_space<vmem>>, vector<32x32xbf16>
    %c0_4 = arith.constant 0 : index
    %c0_5 = arith.constant 0 : index
    %5 = vector.load %arg7[%c0_4, %c0_5] : memref<32x32xf32, #tpu.memory_space<vmem>>, vector<32x32xf32>
    %cst = arith.constant dense<0.000000e+00> : vector<32x32xf32>
    %6 = tpu.matmul %3, %4, %cst {dimension_numbers = #tpu.dot_dimension_numbers<[1], [0], [0], [1], [0, 0, 1, 1], [], []>} : vector<32x32xbf16>, vector<32x32xbf16>, vector<32x32xf32> -> vector<32x32xf32>
    %7 = arith.addf %5, %6 : vector<32x32xf32>
    %c0_6 = arith.constant 0 : index
    %c0_7 = arith.constant 0 : index
    %8 = vector.load %arg7[%c0_6, %c0_7] : memref<32x32xf32, #tpu.memory_space<vmem>>, vector<32x32xf32>
    tpu.vector_store %arg7[%c0_6, %c0_7], %7 {strides = array<i32>} : memref<32x32xf32, #tpu.memory_space<vmem>>, vector<32x32xf32>,
    %c0_i32_8 = arith.constant 0 : i32
    %9 = arith.cmpi eq, %arg2, %c0_i32_8 : i32
    %10 = arith.extui %9 : i1 to i32
    %c0_i32_9 = arith.constant 0 : i32
    %11 = arith.cmpi ne, %10, %c0_i32_9 : i32
    scf.if %11 {
      %c0_10 = arith.constant 0 : index
      %c0_11 = arith.constant 0 : index
      %12 = vector.load %arg7[%c0_10, %c0_11] : memref<32x32xf32, #tpu.memory_space<vmem>>, vector<32x32xf32>
      %c0_12 = arith.constant 0 : index
      %c0_13 = arith.constant 0 : index
      %13 = vector.load %arg5[%c0_12, %c0_13] : memref<32x32xbf16, #tpu.memory_space<vmem>>, vector<32x32xbf16>
      %14 = arith.extf %13 : vector<32x32xbf16> to vector<32x32xf32>
      %15 = arith.addf %12, %14 : vector<32x32xf32>
      %16 = arith.truncf %15 : vector<32x32xf32> to vector<32x32xbf16>
      %c0_14 = arith.constant 0 : index
      %c0_15 = arith.constant 0 : index
      %17 = vector.load %arg6[%c0_14, %c0_15] : memref<32x32xbf16, #tpu.memory_space<vmem>>, vector<32x32xbf16>
      tpu.vector_store %arg6[%c0_14, %c0_15], %16 {strides = array<i32>} : memref<32x32xbf16, #tpu.memory_space<vmem>>, vector<32x32xbf16>,
    } else {
    }
    return
  }
  func.func @transform_0(%arg0: i32, %arg1: i32, %arg2: i32) -> (i32, i32) {
    %c0_i32 = arith.constant 0 : i32
    return %arg0, %arg2 : i32, i32
  }
  func.func @transform_1(%arg0: i32, %arg1: i32, %arg2: i32) -> (i32, i32) {
    %c0_i32 = arith.constant 0 : i32
    return %arg2, %arg1 : i32, i32
  }
  func.func @transform_2(%arg0: i32, %arg1: i32, %arg2: i32) -> (i32, i32) {
    %c0_i32 = arith.constant 0 : i32
    return %arg0, %arg1 : i32, i32
  }
  func.func @transform_3(%arg0: i32, %arg1: i32, %arg2: i32) -> (i32, i32) {
    %c0_i32 = arith.constant 0 : i32
    return %arg0, %arg1 : i32, i32
  }
}

module attributes {stable_mosaic.version = 11 : i64} {
  func.func @kernel(%arg0: i32, %arg1: i32, %arg2: memref<32x32xbf16, #tpu.memory_space<vmem>>, %arg3: memref<1x32xf32, #tpu.memory_space<vmem>>, %arg4: memref<1x32xf32, #tpu.memory_space<vmem>>, %arg5: memref<32x64xbf16, #tpu.memory_space<vmem>>, %arg6: memref<1x64xf32, #tpu.memory_space<vmem>>, %arg7: memref<32x64xbf16, #tpu.memory_space<vmem>>) attributes {dimension_semantics = [#tpu.dimension_semantics<parallel>, #tpu.dimension_semantics<parallel>], iteration_bounds = array<i64: 1, 1>, scalar_prefetch = 0 : i64, scratch_operands = 0 : i64, tpu.core_type = #tpu.core_type<tc>, window_params = [{transform_indices = @transform_0, window_bounds = array<i64: 32, 32>}, {pipeline_mode = #tpu.pipeline_mode<synchronous>, transform_indices = @transform_1, window_bounds = array<i64: 1, 32>}, {pipeline_mode = #tpu.pipeline_mode<synchronous>, transform_indices = @transform_2, window_bounds = array<i64: 1, 32>}, {transform_indices = @transform_3, window_bounds = array<i64: 32, 64>}, {transform_indices = @transform_4, window_bounds = array<i64: 1, 64>}, {transform_indices = @transform_5, window_bounds = array<i64: 32, 64>}]} {
    %c0 = arith.constant 0 : index
    %c0_0 = arith.constant 0 : index
    %0 = vector.load %arg2[%c0, %c0_0] : memref<32x32xbf16, #tpu.memory_space<vmem>>, vector<32x32xbf16>
    %1 = arith.extf %0 : vector<32x32xbf16> to vector<32x32xf32>
    %cst = arith.constant dense<0.000000e+00> : vector<32xf32>
    %2 = vector.multi_reduction <add>, %1, %cst [1] : vector<32x32xf32> to vector<32xf32>
    %3 = vector.shape_cast %2 : vector<32xf32> to vector<32x1xf32>
    %cst_1 = arith.constant 3.200000e+01 : f32
    %4 = vector.broadcast %cst_1 : f32 to vector<32x1xf32>
    %5 = arith.divf %3, %4 : vector<32x1xf32>
    %6 = vector.broadcast %5 : vector<32x1xf32> to vector<32x32xf32>
    %7 = arith.subf %1, %6 : vector<32x32xf32>
    %8 = arith.mulf %7, %7 : vector<32x32xf32>
    %cst_2 = arith.constant dense<0.000000e+00> : vector<32xf32>
    %9 = vector.multi_reduction <add>, %8, %cst_2 [1] : vector<32x32xf32> to vector<32xf32>
    %10 = vector.shape_cast %9 : vector<32xf32> to vector<32x1xf32>
    %cst_3 = arith.constant 3.200000e+01 : f32
    %11 = vector.broadcast %cst_3 : f32 to vector<32x1xf32>
    %12 = arith.divf %10, %11 : vector<32x1xf32>
    %13 = vector.broadcast %5 : vector<32x1xf32> to vector<32x32xf32>
    %14 = arith.subf %1, %13 : vector<32x32xf32>
    %cst_4 = arith.constant 9.99999996E-13 : f32
    %15 = vector.broadcast %cst_4 : f32 to vector<32x1xf32>
    %16 = arith.addf %12, %15 : vector<32x1xf32>
    %17 = math.rsqrt %16 : vector<32x1xf32>
    %18 = vector.broadcast %17 : vector<32x1xf32> to vector<32x32xf32>
    %19 = arith.mulf %14, %18 : vector<32x32xf32>
    %c0_5 = arith.constant 0 : index
    %c0_6 = arith.constant 0 : index
    %20 = vector.load %arg3[%c0_5, %c0_6] : memref<1x32xf32, #tpu.memory_space<vmem>>, vector<1x32xf32>
    %21 = vector.broadcast %20 : vector<1x32xf32> to vector<32x32xf32>
    %22 = arith.mulf %19, %21 : vector<32x32xf32>
    %c0_7 = arith.constant 0 : index
    %c0_8 = arith.constant 0 : index
    %23 = vector.load %arg4[%c0_7, %c0_8] : memref<1x32xf32, #tpu.memory_space<vmem>>, vector<1x32xf32>
    %24 = vector.broadcast %23 : vector<1x32xf32> to vector<32x32xf32>
    %25 = arith.addf %22, %24 : vector<32x32xf32>
    %26 = arith.truncf %25 : vector<32x32xf32> to vector<32x32xbf16>
    %c0_9 = arith.constant 0 : index
    %c0_10 = arith.constant 0 : index
    %27 = vector.load %arg5[%c0_9, %c0_10] : memref<32x64xbf16, #tpu.memory_space<vmem>>, vector<32x64xbf16>
    %cst_11 = arith.constant dense<0.000000e+00> : vector<32x64xf32>
    %28 = tpu.matmul %26, %27, %cst_11 {dimension_numbers = #tpu.dot_dimension_numbers<[1], [0], [0], [1], [0, 0, 1, 1], [], []>} : vector<32x32xbf16>, vector<32x64xbf16>, vector<32x64xf32> -> vector<32x64xf32>
    %c0_12 = arith.constant 0 : index
    %c0_13 = arith.constant 0 : index
    %29 = vector.load %arg6[%c0_12, %c0_13] : memref<1x64xf32, #tpu.memory_space<vmem>>, vector<1x64xf32>
    %30 = vector.broadcast %29 : vector<1x64xf32> to vector<32x64xf32>
    %31 = arith.addf %28, %30 : vector<32x64xf32>
    %cst_14 = arith.constant 0.000000e+00 : f32
    %32 = vector.broadcast %cst_14 : f32 to vector<32x64xf32>
    %33 = arith.maximumf %31, %32 : vector<32x64xf32>
    %34 = arith.truncf %33 : vector<32x64xf32> to vector<32x64xbf16>
    %c0_15 = arith.constant 0 : index
    %c0_16 = arith.constant 0 : index
    %35 = vector.load %arg7[%c0_15, %c0_16] : memref<32x64xbf16, #tpu.memory_space<vmem>>, vector<32x64xbf16>
    tpu.vector_store %arg7[%c0_15, %c0_16], %34 {strides = array<i32>} : memref<32x64xbf16, #tpu.memory_space<vmem>>, vector<32x64xbf16>,
    return
  }
  func.func @transform_0(%arg0: i32, %arg1: i32) -> (i32, i32) {
    %c0_i32 = arith.constant 0 : i32
    %c0_i32_0 = arith.constant 0 : i32
    return %arg0, %c0_i32 : i32, i32
  }
  func.func @transform_1(%arg0: i32, %arg1: i32) -> (i32, i32) {
    %c0_i32 = arith.constant 0 : i32
    %c0_i32_0 = arith.constant 0 : i32
    %c0_i32_1 = arith.constant 0 : i32
    return %c0_i32, %c0_i32_0 : i32, i32
  }
  func.func @transform_2(%arg0: i32, %arg1: i32) -> (i32, i32) {
    %c0_i32 = arith.constant 0 : i32
    %c0_i32_0 = arith.constant 0 : i32
    %c0_i32_1 = arith.constant 0 : i32
    return %c0_i32, %c0_i32_0 : i32, i32
  }
  func.func @transform_3(%arg0: i32, %arg1: i32) -> (i32, i32) {
    %c0_i32 = arith.constant 0 : i32
    %c0_i32_0 = arith.constant 0 : i32
    return %c0_i32, %arg1 : i32, i32
  }
  func.func @transform_4(%arg0: i32, %arg1: i32) -> (i32, i32) {
    %c0_i32 = arith.constant 0 : i32
    %c0_i32_0 = arith.constant 0 : i32
    return %c0_i32, %arg1 : i32, i32
  }
  func.func @transform_5(%arg0: i32, %arg1: i32) -> (i32, i32) {
    %c0_i32 = arith.constant 0 : i32
    return %arg0, %arg1 : i32, i32
  }
}

module attributes {stable_mosaic.version = 11 : i64} {
  func.func @kernel(%arg0: i32, %arg1: i32, %arg2: i32, %arg3: memref<32x64xbf16, #tpu.memory_space<vmem>>, %arg4: memref<64x32xbf16, #tpu.memory_space<vmem>>, %arg5: memref<1x32xf32, #tpu.memory_space<vmem>>, %arg6: memref<32x32xbf16, #tpu.memory_space<vmem>>, %arg7: memref<32x32xbf16, #tpu.memory_space<vmem>>, %arg8: memref<32x32xf32, #tpu.memory_space<vmem>>) attributes {dimension_semantics = [#tpu.dimension_semantics<parallel>, #tpu.dimension_semantics<parallel>, #tpu.dimension_semantics<arbitrary>], iteration_bounds = array<i64: 1, 1, 1>, scalar_prefetch = 0 : i64, scratch_operands = 1 : i64, tpu.core_type = #tpu.core_type<tc>, window_params = [{transform_indices = @transform_0, window_bounds = array<i64: 32, 64>}, {transform_indices = @transform_1, window_bounds = array<i64: 64, 32>}, {transform_indices = @transform_2, window_bounds = array<i64: 1, 32>}, {transform_indices = @transform_3, window_bounds = array<i64: 32, 32>}, {transform_indices = @transform_4, window_bounds = array<i64: 32, 32>}]} {
    %c0_i32 = arith.constant 0 : i32
    %0 = arith.cmpi eq, %arg2, %c0_i32 : i32
    %1 = arith.extui %0 : i1 to i32
    %c0_i32_0 = arith.constant 0 : i32
    %2 = arith.cmpi ne, %1, %c0_i32_0 : i32
    scf.if %2 {
      %cst_10 = arith.constant 0.000000e+00 : f32
      %12 = vector.broadcast %cst_10 : f32 to vector<32x32xf32>
      %c0_11 = arith.constant 0 : index
      %c0_12 = arith.constant 0 : index
      %13 = vector.load %arg8[%c0_11, %c0_12] : memref<32x32xf32, #tpu.memory_space<vmem>>, vector<32x32xf32>
      tpu.vector_store %arg8[%c0_11, %c0_12], %12 {strides = array<i32>} : memref<32x32xf32, #tpu.memory_space<vmem>>, vector<32x32xf32>,
    } else {
    }
    %c0 = arith.constant 0 : index
    %c0_1 = arith.constant 0 : index
    %3 = vector.load %arg3[%c0, %c0_1] : memref<32x64xbf16, #tpu.memory_space<vmem>>, vector<32x64xbf16>
    %c0_2 = arith.constant 0 : index
    %c0_3 = arith.constant 0 : index
    %4 = vector.load %arg4[%c0_2, %c0_3] : memref<64x32xbf16, #tpu.memory_space<vmem>>, vector<64x32xbf16>
    %c0_4 = arith.constant 0 : index
    %c0_5 = arith.constant 0 : index
    %5 = vector.load %arg8[%c0_4, %c0_5] : memref<32x32xf32, #tpu.memory_space<vmem>>, vector<32x32xf32>
    %cst = arith.constant dense<0.000000e+00> : vector<32x32xf32>
    %6 = tpu.matmul %3, %4, %cst {dimension_numbers = #tpu.dot_dimension_numbers<[1], [0], [0], [1], [0, 0, 1, 1], [], []>} : vector<32x64xbf16>, vector<64x32xbf16>, vector<32x32xf32> -> vector<32x32xf32>
    %7 = arith.addf %5, %6 : vector<32x32xf32>
    %c0_6 = arith.constant 0 : index
    %c0_7 = arith.constant 0 : index
    %8 = vector.load %arg8[%c0_6, %c0_7] : memref<32x32xf32, #tpu.memory_space<vmem>>, vector<32x32xf32>
    tpu.vector_store %arg8[%c0_6, %c0_7], %7 {strides = array<i32>} : memref<32x32xf32, #tpu.memory_space<vmem>>, vector<32x32xf32>,
    %c0_i32_8 = arith.constant 0 : i32
    %9 = arith.cmpi eq, %arg2, %c0_i32_8 : i32
    %10 = arith.extui %9 : i1 to i32
    %c0_i32_9 = arith.constant 0 : i32
    %11 = arith.cmpi ne, %10, %c0_i32_9 : i32
    scf.if %11 {
      %c0_10 = arith.constant 0 : index
      %c0_11 = arith.constant 0 : index
      %12 = vector.load %arg8[%c0_10, %c0_11] : memref<32x32xf32, #tpu.memory_space<vmem>>, vector<32x32xf32>
      %c0_12 = arith.constant 0 : index
      %c0_13 = arith.constant 0 : index
      %13 = vector.load %arg5[%c0_12, %c0_13] : memref<1x32xf32, #tpu.memory_space<vmem>>, vector<1x32xf32>
      %14 = vector.broadcast %13 : vector<1x32xf32> to vector<32x32xf32>
      %15 = arith.addf %12, %14 : vector<32x32xf32>
      %c0_14 = arith.constant 0 : index
      %c0_15 = arith.constant 0 : index
      %16 = vector.load %arg6[%c0_14, %c0_15] : memref<32x32xbf16, #tpu.memory_space<vmem>>, vector<32x32xbf16>
      %17 = arith.extf %16 : vector<32x32xbf16> to vector<32x32xf32>
      %18 = arith.addf %15, %17 : vector<32x32xf32>
      %19 = arith.truncf %18 : vector<32x32xf32> to vector<32x32xbf16>
      %c0_16 = arith.constant 0 : index
      %c0_17 = arith.constant 0 : index
      %20 = vector.load %arg7[%c0_16, %c0_17] : memref<32x32xbf16, #tpu.memory_space<vmem>>, vector<32x32xbf16>
      tpu.vector_store %arg7[%c0_16, %c0_17], %19 {strides = array<i32>} : memref<32x32xbf16, #tpu.memory_space<vmem>>, vector<32x32xbf16>,
    } else {
    }
    return
  }
  func.func @transform_0(%arg0: i32, %arg1: i32, %arg2: i32) -> (i32, i32) {
    %c0_i32 = arith.constant 0 : i32
    return %arg0, %arg2 : i32, i32
  }
  func.func @transform_1(%arg0: i32, %arg1: i32, %arg2: i32) -> (i32, i32) {
    %c0_i32 = arith.constant 0 : i32
    return %arg2, %arg1 : i32, i32
  }
  func.func @transform_2(%arg0: i32, %arg1: i32, %arg2: i32) -> (i32, i32) {
    %c0_i32 = arith.constant 0 : i32
    %c0_i32_0 = arith.constant 0 : i32
    return %c0_i32, %arg1 : i32, i32
  }
  func.func @transform_3(%arg0: i32, %arg1: i32, %arg2: i32) -> (i32, i32) {
    %c0_i32 = arith.constant 0 : i32
    return %arg0, %arg1 : i32, i32
  }
  func.func @transform_4(%arg0: i32, %arg1: i32, %arg2: i32) -> (i32, i32) {
    %c0_i32 = arith.constant 0 : i32
    return %arg0, %arg1 : i32, i32
  }
}

module attributes {stable_mosaic.version = 11 : i64} {
  func.func @_final_kernel(%arg0: i32, %arg1: i32, %arg2: memref<32x32xbf16, #tpu.memory_space<vmem>>, %arg3: memref<32x32xbf16, #tpu.memory_space<vmem>>, %arg4: memref<1x32xf32, #tpu.memory_space<vmem>>, %arg5: memref<1x32xf32, #tpu.memory_space<vmem>>, %arg6: memref<1x32xf32, #tpu.memory_space<vmem>>, %arg7: memref<1x32xf32, #tpu.memory_space<vmem>>, %arg8: memref<32x256xbf16, #tpu.memory_space<vmem>>, %arg9: memref<32x256xbf16, #tpu.memory_space<vmem>>, %arg10: memref<1x256xf32, #tpu.memory_space<vmem>>, %arg11: memref<32x256xf32, #tpu.memory_space<vmem>>, %arg12: memref<32x32xbf16, #tpu.memory_space<vmem>>, %arg13: memref<32x32xbf16, #tpu.memory_space<vmem>>) attributes {dimension_semantics = [#tpu.dimension_semantics<parallel>, #tpu.dimension_semantics<arbitrary>], iteration_bounds = array<i64: 1, 1>, scalar_prefetch = 0 : i64, scratch_operands = 2 : i64, tpu.core_type = #tpu.core_type<tc>, window_params = [{transform_indices = @transform_0, window_bounds = array<i64: 32, 32>}, {transform_indices = @transform_1, window_bounds = array<i64: 32, 32>}, {pipeline_mode = #tpu.pipeline_mode<synchronous>, transform_indices = @transform_2, window_bounds = array<i64: 1, 32>}, {pipeline_mode = #tpu.pipeline_mode<synchronous>, transform_indices = @transform_3, window_bounds = array<i64: 1, 32>}, {pipeline_mode = #tpu.pipeline_mode<synchronous>, transform_indices = @transform_4, window_bounds = array<i64: 1, 32>}, {pipeline_mode = #tpu.pipeline_mode<synchronous>, transform_indices = @transform_5, window_bounds = array<i64: 1, 32>}, {transform_indices = @transform_6, window_bounds = array<i64: 32, 256>}, {transform_indices = @transform_7, window_bounds = array<i64: 32, 256>}, {transform_indices = @transform_8, window_bounds = array<i64: 1, 256>}, {transform_indices = @transform_9, window_bounds = array<i64: 32, 256>}]} {
    %c0_i32 = arith.constant 0 : i32
    %0 = arith.cmpi eq, %arg1, %c0_i32 : i32
    %1 = arith.extui %0 : i1 to i32
    %c0_i32_0 = arith.constant 0 : i32
    %2 = arith.cmpi ne, %1, %c0_i32_0 : i32
    scf.if %2 {
      %c0_13 = arith.constant 0 : index
      %c0_14 = arith.constant 0 : index
      %14 = vector.load %arg2[%c0_13, %c0_14] : memref<32x32xbf16, #tpu.memory_space<vmem>>, vector<32x32xbf16>
      %15 = arith.extf %14 : vector<32x32xbf16> to vector<32x32xf32>
      %c0_15 = arith.constant 0 : index
      %c0_16 = arith.constant 0 : index
      %16 = vector.load %arg3[%c0_15, %c0_16] : memref<32x32xbf16, #tpu.memory_space<vmem>>, vector<32x32xbf16>
      %17 = arith.extf %16 : vector<32x32xbf16> to vector<32x32xf32>
      %cst_17 = arith.constant dense<0.000000e+00> : vector<32xf32>
      %18 = vector.multi_reduction <add>, %15, %cst_17 [1] : vector<32x32xf32> to vector<32xf32>
      %19 = vector.shape_cast %18 : vector<32xf32> to vector<32x1xf32>
      %cst_18 = arith.constant dense<0.000000e+00> : vector<32xf32>
      %20 = vector.multi_reduction <add>, %17, %cst_18 [1] : vector<32x32xf32> to vector<32xf32>
      %21 = vector.shape_cast %20 : vector<32xf32> to vector<32x1xf32>
      %22 = arith.addf %19, %21 : vector<32x1xf32>
      %cst_19 = arith.constant 6.400000e+01 : f32
      %23 = vector.broadcast %cst_19 : f32 to vector<32x1xf32>
      %24 = arith.divf %22, %23 : vector<32x1xf32>
      %25 = vector.broadcast %24 : vector<32x1xf32> to vector<32x32xf32>
      %26 = arith.subf %15, %25 : vector<32x32xf32>
      %27 = arith.mulf %26, %26 : vector<32x32xf32>
      %cst_20 = arith.constant dense<0.000000e+00> : vector<32xf32>
      %28 = vector.multi_reduction <add>, %27, %cst_20 [1] : vector<32x32xf32> to vector<32xf32>
      %29 = vector.shape_cast %28 : vector<32xf32> to vector<32x1xf32>
      %30 = vector.broadcast %24 : vector<32x1xf32> to vector<32x32xf32>
      %31 = arith.subf %17, %30 : vector<32x32xf32>
      %32 = arith.mulf %31, %31 : vector<32x32xf32>
      %cst_21 = arith.constant dense<0.000000e+00> : vector<32xf32>
      %33 = vector.multi_reduction <add>, %32, %cst_21 [1] : vector<32x32xf32> to vector<32xf32>
      %34 = vector.shape_cast %33 : vector<32xf32> to vector<32x1xf32>
      %35 = arith.addf %29, %34 : vector<32x1xf32>
      %cst_22 = arith.constant 6.400000e+01 : f32
      %36 = vector.broadcast %cst_22 : f32 to vector<32x1xf32>
      %37 = arith.divf %35, %36 : vector<32x1xf32>
      %cst_23 = arith.constant 9.99999996E-13 : f32
      %38 = vector.broadcast %cst_23 : f32 to vector<32x1xf32>
      %39 = arith.addf %37, %38 : vector<32x1xf32>
      %40 = math.rsqrt %39 : vector<32x1xf32>
      %41 = vector.broadcast %24 : vector<32x1xf32> to vector<32x32xf32>
      %42 = arith.subf %15, %41 : vector<32x32xf32>
      %43 = vector.broadcast %40 : vector<32x1xf32> to vector<32x32xf32>
      %44 = arith.mulf %42, %43 : vector<32x32xf32>
      %c0_24 = arith.constant 0 : index
      %c0_25 = arith.constant 0 : index
      %45 = vector.load %arg4[%c0_24, %c0_25] : memref<1x32xf32, #tpu.memory_space<vmem>>, vector<1x32xf32>
      %46 = vector.broadcast %45 : vector<1x32xf32> to vector<32x32xf32>
      %47 = arith.mulf %44, %46 : vector<32x32xf32>
      %c0_26 = arith.constant 0 : index
      %c0_27 = arith.constant 0 : index
      %48 = vector.load %arg6[%c0_26, %c0_27] : memref<1x32xf32, #tpu.memory_space<vmem>>, vector<1x32xf32>
      %49 = vector.broadcast %48 : vector<1x32xf32> to vector<32x32xf32>
      %50 = arith.addf %47, %49 : vector<32x32xf32>
      %51 = arith.truncf %50 : vector<32x32xf32> to vector<32x32xbf16>
      %c0_28 = arith.constant 0 : index
      %c0_29 = arith.constant 0 : index
      %52 = vector.load %arg12[%c0_28, %c0_29] : memref<32x32xbf16, #tpu.memory_space<vmem>>, vector<32x32xbf16>
      tpu.vector_store %arg12[%c0_28, %c0_29], %51 {strides = array<i32>} : memref<32x32xbf16, #tpu.memory_space<vmem>>, vector<32x32xbf16>,
      %53 = vector.broadcast %24 : vector<32x1xf32> to vector<32x32xf32>
      %54 = arith.subf %17, %53 : vector<32x32xf32>
      %55 = vector.broadcast %40 : vector<32x1xf32> to vector<32x32xf32>
      %56 = arith.mulf %54, %55 : vector<32x32xf32>
      %c0_30 = arith.constant 0 : index
      %c0_31 = arith.constant 0 : index
      %57 = vector.load %arg5[%c0_30, %c0_31] : memref<1x32xf32, #tpu.memory_space<vmem>>, vector<1x32xf32>
      %58 = vector.broadcast %57 : vector<1x32xf32> to vector<32x32xf32>
      %59 = arith.mulf %56, %58 : vector<32x32xf32>
      %c0_32 = arith.constant 0 : index
      %c0_33 = arith.constant 0 : index
      %60 = vector.load %arg7[%c0_32, %c0_33] : memref<1x32xf32, #tpu.memory_space<vmem>>, vector<1x32xf32>
      %61 = vector.broadcast %60 : vector<1x32xf32> to vector<32x32xf32>
      %62 = arith.addf %59, %61 : vector<32x32xf32>
      %63 = arith.truncf %62 : vector<32x32xf32> to vector<32x32xbf16>
      %c0_34 = arith.constant 0 : index
      %c0_35 = arith.constant 0 : index
      %64 = vector.load %arg13[%c0_34, %c0_35] : memref<32x32xbf16, #tpu.memory_space<vmem>>, vector<32x32xbf16>
      tpu.vector_store %arg13[%c0_34, %c0_35], %63 {strides = array<i32>} : memref<32x32xbf16, #tpu.memory_space<vmem>>, vector<32x32xbf16>,
    } else {
    }
    %c0 = arith.constant 0 : index
    %c0_1 = arith.constant 0 : index
    %3 = vector.load %arg12[%c0, %c0_1] : memref<32x32xbf16, #tpu.memory_space<vmem>>, vector<32x32xbf16>
    %c0_2 = arith.constant 0 : index
    %c0_3 = arith.constant 0 : index
    %4 = vector.load %arg8[%c0_2, %c0_3] : memref<32x256xbf16, #tpu.memory_space<vmem>>, vector<32x256xbf16>
    %cst = arith.constant dense<0.000000e+00> : vector<32x256xf32>
    %5 = tpu.matmul %3, %4, %cst {dimension_numbers = #tpu.dot_dimension_numbers<[1], [0], [0], [1], [0, 0, 1, 1], [], []>} : vector<32x32xbf16>, vector<32x256xbf16>, vector<32x256xf32> -> vector<32x256xf32>
    %c0_4 = arith.constant 0 : index
    %c0_5 = arith.constant 0 : index
    %6 = vector.load %arg13[%c0_4, %c0_5] : memref<32x32xbf16, #tpu.memory_space<vmem>>, vector<32x32xbf16>
    %c0_6 = arith.constant 0 : index
    %c0_7 = arith.constant 0 : index
    %7 = vector.load %arg9[%c0_6, %c0_7] : memref<32x256xbf16, #tpu.memory_space<vmem>>, vector<32x256xbf16>
    %cst_8 = arith.constant dense<0.000000e+00> : vector<32x256xf32>
    %8 = tpu.matmul %6, %7, %cst_8 {dimension_numbers = #tpu.dot_dimension_numbers<[1], [0], [0], [1], [0, 0, 1, 1], [], []>} : vector<32x32xbf16>, vector<32x256xbf16>, vector<32x256xf32> -> vector<32x256xf32>
    %9 = arith.addf %5, %8 : vector<32x256xf32>
    %c0_9 = arith.constant 0 : index
    %c0_10 = arith.constant 0 : index
    %10 = vector.load %arg10[%c0_9, %c0_10] : memref<1x256xf32, #tpu.memory_space<vmem>>, vector<1x256xf32>
    %11 = vector.broadcast %10 : vector<1x256xf32> to vector<32x256xf32>
    %12 = arith.addf %9, %11 : vector<32x256xf32>
    %c0_11 = arith.constant 0 : index
    %c0_12 = arith.constant 0 : index
    %13 = vector.load %arg11[%c0_11, %c0_12] : memref<32x256xf32, #tpu.memory_space<vmem>>, vector<32x256xf32>
    tpu.vector_store %arg11[%c0_11, %c0_12], %12 {strides = array<i32>} : memref<32x256xf32, #tpu.memory_space<vmem>>, vector<32x256xf32>,
    return
  }
  func.func @transform_0(%arg0: i32, %arg1: i32) -> (i32, i32) {
    %c0_i32 = arith.constant 0 : i32
    %c0_i32_0 = arith.constant 0 : i32
    return %arg0, %c0_i32 : i32, i32
  }
  func.func @transform_1(%arg0: i32, %arg1: i32) -> (i32, i32) {
    %c0_i32 = arith.constant 0 : i32
    %c0_i32_0 = arith.constant 0 : i32
    return %arg0, %c0_i32 : i32, i32
  }
  func.func @transform_2(%arg0: i32, %arg1: i32) -> (i32, i32) {
    %c0_i32 = arith.constant 0 : i32
    %c0_i32_0 = arith.constant 0 : i32
    %c0_i32_1 = arith.constant 0 : i32
    return %c0_i32, %c0_i32_0 : i32, i32
  }
  func.func @transform_3(%arg0: i32, %arg1: i32) -> (i32, i32) {
    %c0_i32 = arith.constant 0 : i32
    %c0_i32_0 = arith.constant 0 : i32
    %c0_i32_1 = arith.constant 0 : i32
    return %c0_i32, %c0_i32_0 : i32, i32
  }
  func.func @transform_4(%arg0: i32, %arg1: i32) -> (i32, i32) {
    %c0_i32 = arith.constant 0 : i32
    %c0_i32_0 = arith.constant 0 : i32
    %c0_i32_1 = arith.constant 0 : i32
    return %c0_i32, %c0_i32_0 : i32, i32
  }
  func.func @transform_5(%arg0: i32, %arg1: i32) -> (i32, i32) {
    %c0_i32 = arith.constant 0 : i32
    %c0_i32_0 = arith.constant 0 : i32
    %c0_i32_1 = arith.constant 0 : i32
    return %c0_i32, %c0_i32_0 : i32, i32
  }
  func.func @transform_6(%arg0: i32, %arg1: i32) -> (i32, i32) {
    %c0_i32 = arith.constant 0 : i32
    %c0_i32_0 = arith.constant 0 : i32
    return %c0_i32, %arg1 : i32, i32
  }
  func.func @transform_7(%arg0: i32, %arg1: i32) -> (i32, i32) {
    %c0_i32 = arith.constant 0 : i32
    %c0_i32_0 = arith.constant 0 : i32
    return %c0_i32, %arg1 : i32, i32
  }
  func.func @transform_8(%arg0: i32, %arg1: i32) -> (i32, i32) {
    %c0_i32 = arith.constant 0 : i32
    %c0_i32_0 = arith.constant 0 : i32
    return %c0_i32, %arg1 : i32, i32
  }
  func.func @transform_9(%arg0: i32, %arg1: i32) -> (i32, i32) {
    %c0_i32 = arith.constant 0 : i32
    return %arg0, %arg1 : i32, i32
  }
}

</mosaic_0001>

<bundles_post_ra>
// kernel: reformer_mlm_forward.11
= control target key start
LH: loop header
LB: loop body
LE: loop exit
PB: predicated region body
PF: predicated region fallthrough
CT: control target
= control target key end

     0   :  { %vm26_vm0 = vcmask 261120   ;;  %vm191_vm1 = vcmask 781312   ;;  %s310_s0 = inlined_call_operand.vmem [shape: bf16[32,32], index: 0, kind: input, shape index: {}]   ;;  %s311_s3 = inlined_call_operand.vmem [shape: bf16[32,96], index: 3, kind: input, shape index: {}]   ;;  %s312_s1 = inlined_call_operand.vmem [shape: f32[1,32], index: 1, kind: input, shape index: {}]   ;;  %s313_s2 = inlined_call_operand.vmem [shape: f32[1,32], index: 2, kind: input, shape index: {}]   ;;  %s314_s4 = inlined_call_operand.vmem [shape: bf16[32,96], index: 4, kind: output, shape index: {}]  }
   0x1   :  { %v215_v0 = vld [vmem:[%s310_s0] sm:$0xff]   ;;  %v222_v1 = vld [vmem:[%s310_s0 + $0x8] sm:$0xff]  }
   0x2   :  { %v216_v2 = vunpack.c.l.bf16 %v215_v0  ;;  %v220_v3 = vunpack.c.l.bf16 %v222_v1  ;;  %v217_v4 = vunpack.c.h.bf16 %v215_v0  ;;  %v221_v5 = vunpack.c.h.bf16 %v222_v1  ;;  %v235_v30 = vld [vmem:[%s311_s3] sm:$0xff]   ;;  %v236_v31 = vld [vmem:[%s311_s3 + $0x8] sm:$0xff]  }
   0x3   :  { %227 = vmatprep.subr.bf16.mxu0 %v235_v30  ;;  %v200_v46 = vld [vmem:[%s312_s1] ss:$0 sm:$0xff] }
   0x4   :  { %v27_v6 = vsel %vm26_vm0, %v216_v2, 0.0  ;;  %v33_v7 = vsel %vm26_vm0, %v220_v3, 0.0  ;;  %v30_v8 = vsel %vm26_vm0, %v217_v4, 0.0  ;;  %v36_v9 = vsel %vm26_vm0, %v221_v5, 0.0  ;;  %228 = vmatpush3.bf16.msra.mxu0 %v235_v30  ;;  %v201_v52 = vld [vmem:[%s313_s2] ss:$0 sm:$0xff] }
   0x5   :  { %28 = vadd.xlane.f32.xlu0 %v27_v6  ;;  %34 = vadd.xlane.f32.xlu1 %v33_v7 }
   0x6   :  { %229 = vmatprep.subr.bf16.mxu0 %v236_v31 }
   0x8   :  { %230 = vmatpush3.bf16.msra.mxu0 %v236_v31 }
   0x9   :  { %31 = vadd.xlane.f32.xlu0 %v30_v8  ;;  %37 = vadd.xlane.f32.xlu1 %v36_v9 }
  0x92   :  { %v29_v10 = vpop.xlane.xlu0 %28  ;;  %v35_v11 = vpop.xlane.xlu1 %34 }
  0x93   :  { %v40_v12 = vmul.f32 0.03125, %v29_v10  ;;  %v42_v13 = vmul.f32 0.03125, %v35_v11 }
  0x95   :  { %v44_v14 = vsub.f32 %v216_v2, %v40_v12  ;;  %v46_v15 = vsub.f32 %v220_v3, %v42_v13 }
  0x96   :  { %v32_v16 = vpop.xlane.xlu0 %31  ;;  %v38_v17 = vpop.xlane.xlu1 %37 }
  0x97   :  { %v41_v18 = vmul.f32 0.03125, %v32_v16  ;;  %v43_v19 = vmul.f32 0.03125, %v38_v17  ;;  %v48_v20 = vmul.f32 %v44_v14, %v44_v14  ;;  %v50_v21 = vmul.f32 %v46_v15, %v46_v15 }
  0x99   :  { %v45_v22 = vsub.f32 %v217_v4, %v41_v18  ;;  %v47_v23 = vsub.f32 %v221_v5, %v43_v19  ;;  %v52_v24 = vsel %vm26_vm0, %v48_v20, 0.0  ;;  %v58_v25 = vsel %vm26_vm0, %v50_v21, 0.0 }
  0x9a   :  { %53 = vadd.xlane.f32.xlu0 %v52_v24 }
  0x9b   :  { %v49_v26 = vmul.f32 %v45_v22, %v45_v22  ;;  %v51_v27 = vmul.f32 %v47_v23, %v47_v23 }
  0x9d   :  { %v55_v28 = vsel %vm26_vm0, %v49_v26, 0.0  ;;  %v61_v29 = vsel %vm26_vm0, %v51_v27, 0.0 }
  0x9e   :  { %59 = vadd.xlane.f32.xlu0 %v58_v25  ;;  %56 = vadd.xlane.f32.xlu1 %v55_v28 }
  0xa2   :  { %62 = vadd.xlane.f32.xlu1 %v61_v29 }
 0x127   :  { %v54_v32 = vpop.xlane.xlu0 %53 }
 0x128   :  { %v64_v33 = vmul.f32 0.03125, %v54_v32 }
 0x12a   :  { %v68_v34 = vadd.f32 1e-12, %v64_v33 }
 0x12b   :  { %v57_v35 = vpop.xlane.xlu1 %56  ;;  %v60_v36 = vpop.xlane.xlu0 %59 }
 0x12c   :  { %237 = vrsqrt.f32 %v68_v34  ;;  %v65_v37 = vmul.f32 0.03125, %v57_v35  ;;  %v66_v38 = vmul.f32 0.03125, %v60_v36 }
 0x12e   :  { %v69_v39 = vadd.f32 1e-12, %v65_v37  ;;  %v70_v40 = vadd.f32 1e-12, %v66_v38 }
 0x12f   :  { %v63_v41 = vpop.xlane.xlu1 %62 }
 0x130   :  { %239 = vrsqrt.f32 %v69_v39  ;;  %v67_v42 = vmul.f32 0.03125, %v63_v41 }
 0x131   :  { %241 = vrsqrt.f32 %v70_v40 }
 0x132   :  { %v71_v43 = vadd.f32 1e-12, %v67_v42 }
 0x134   :  { %243 = vrsqrt.f32 %v71_v43 }
 0x136   :  { %v238_v44 = vpop.eup %237 }
 0x137   :  { %v76_v45 = vmul.f32 %v238_v44, %v44_v14 }
 0x139   :  { %v87_v50 = vmul.f32 %v200_v46, %v76_v45 }
 0x13a   :  { %v240_v47 = vpop.eup %239 }
 0x13b   :  { %v242_v48 = vpop.eup %241  ;;  %v77_v49 = vmul.f32 %v240_v47, %v45_v22  ;;  %v98_v56 = vadd.f32 %v201_v52, %v87_v50 }
 0x13c   :  { %v78_v51 = vmul.f32 %v242_v48, %v46_v15 }
 0x13d   :  { %v88_v53 = vmul.f32 %v200_v46, %v77_v49 }
 0x13e   :  { %v244_v54 = vpop.eup %243  ;;  %v89_v58 = vmul.f32 %v200_v46, %v78_v51 }
 0x13f   :  { %v79_v55 = vmul.f32 %v244_v54, %v47_v23  ;;  %v99_v57 = vadd.f32 %v201_v52, %v88_v53 }
 0x140   :  { %v100_v61 = vadd.f32 %v201_v52, %v89_v58 }
 0x141   :  { %v102_v59 = vpack.c.bf16 %v99_v57, %v98_v56  ;;  %v90_v60 = vmul.f32 %v200_v46, %v79_v55 }
 0x143   :  { %231 = vmatprep.mubr.msk.bf16.mxu0 %vm26_vm0, %v102_v59  ;;  %v101_v62 = vadd.f32 %v201_v52, %v90_v60 }
 0x145   :  { %v103_v63 = vpack.c.bf16 %v101_v62, %v100_v61 }
 0x147   :  { %232 = vmatmul.mubr.msk.bf16.vlgmr.msra.gmra.mrb[0].mxu0 %vm26_vm0, %v103_v63 }
 0x21a   :  { %v233_v0 = vpop.f32.mrb[0].mxu0 }
 0x21b   :  { %v212_v1 = vpack.c.bf16 %v233_v0, %v233_v0  ;;  %v160_v2 = vpop.f32.mrb[1].mxu0 }
 0x21c   :  { %v210_v3 = vpack.c.bf16 %v160_v2, %v160_v2  ;;  %v234_v4 = vpop.f32.mrb[2].mxu0 }
 0x21d   :  { %194 = vst.msk [vmem:[%s314_s4 + $0x8] sm:$0xf] %vm191_vm1, %v212_v1  ;;  %v213_v5 = vpack.c.bf16 %v234_v4, %v234_v4  ;;  %v163_v6 = vpop.f32.mrb[3].mxu0 }
 0x21e   :  { %192 = vst.msk [vmem:[%s314_s4] sm:$0xf] %vm191_vm1, %v210_v3  ;;  %v211_v7 = vpack.c.bf16 %v163_v6, %v163_v6 }
 0x21f   :  { %195 = vst.msk [vmem:[%s314_s4 + $0xc] sm:$0xf] %vm191_vm1, %v213_v5 }
 0x220   :  { %193 = vst.msk [vmem:[%s314_s4 + $0x4] sm:$0xf] %vm191_vm1, %v211_v7 }

// kernel: reformer_mlm_forward.12
= control target key start
LH: loop header
LB: loop body
LE: loop exit
PB: predicated region body
PF: predicated region fallthrough
CT: control target
= control target key end

     0   :  { %s980_s15 = smov 0   ;;  %s982_s16 = smov 0   ;;  %s1064_s0 = inlined_call_operand.vmem [shape: bf16[2,2,16,16], index: 0, kind: input, shape index: {}]   ;;  %s1065_s1 = inlined_call_operand.vmem [shape: bf16[2,2,16,16], index: 1, kind: input, shape index: {}]   ;;  %s1066_s2 = inlined_call_operand.vmem [shape: bf16[2,2,16,16], index: 2, kind: input, shape index: {}]   ;;  %s1067_s3 = inlined_call_operand.vmem [shape: f32[2,1,16], index: 3, kind: input, shape index: {}]   ;;  %s1068_s4 = inlined_call_operand.vmem [shape: bf16[2,2,16,16], index: 4, kind: output, shape index: {}]  }
   0x1   :  { %s984_s17 = smov 0   ;;  %s986_s18 = smov 0  }
   0x2   :  { %s988_s19 = smov 0  }
   0x3 LB: > { %s36_s20 = sadd.s32 1, %s941_s17  ;;  %s40_s21 = sadd.s32 1, %s945_s18  ;;  %s949_s19 = sphi %s988_s19, %s14_s19   ;;  %s945_s18 = sphi %s986_s18, %s1072_s18   ;;  %s941_s17 = sphi %s984_s17, %s1071_s17   ;;  %s937_s16 = sphi %s982_s16, %s1070_s16   ;;  %s933_s15 = sphi %s980_s15, %s1069_s15  }
   0x4   : > { %p38_p0 = scmp.ge.s32.totalorder %s36_s20, 2  ;;  %p809_p1 = scmp.ge.s32.totalorder %s949_s19, 1 }
   0x5   : > { %p262_p2 = scmp.lt.s32.totalorder %s949_s19, 5 }
   0x6   : > { %s1074_s20 = smov (%p38_p0, %s36_s20), 0  ;;  %s1076_s21 = smov (!%p38_p0, %s40_s21), %s945_s18 }
   0x7   : > { %p263_p3 = pnand %p809_p1, %p262_p2  ;;  %p42_p4 = scmp.ge.s32.totalorder %s1076_s21, 2 }
   0x8   : > { %p336_p5 = scmp.lt.s32.totalorder (!%p263_p3), %s937_s16, 1  ;;  %p338_p6 = scmp.lt.s32.totalorder (!%p263_p3), %s933_s15, 1  ;;  %vm405_vm0 = vcmask (!%p263_p3), 130048   ;;  %v951_v0 = vmov (!%p263_p3), 0.0   ;;  %vm952_vm1 = vmmov (!%p263_p3), 0   ;;  %vm400_vm2 = vcmask (!%p263_p3), 7168  }
   0x9   : > { %s1078_s21 = smov (%p42_p4, %s1076_s21), 0  ;;  %266 = sbr.rel (%p263_p3) target bundleno = 828 (0x33c), region = 36 }
   0xa   : > { %838 = vmatprep.subr.bf16.mxu0 (!%p263_p3), %v951_v0  ;;  %840 = vmatprep.mubr.msk.bf16.mxu0 (!%p263_p3), %vm952_vm1, %v951_v0  ;;  %406 = vst.msk [vmem:[#allocation4] sm:$0xff] (!%p263_p3), %vm405_vm0, %v951_v0  ;;  %407 = vst.msk [vmem:[#allocation4 + $0x8] sm:$0xff] (!%p263_p3), %vm405_vm0, %v951_v0  ;;  %v953_v3 = vmov (!%p263_p3), -inf   ;;  %v954_v13 = vmov (!%p263_p3), 0   ;;  %vm624_vm3 = vcmask (!%p263_p3), 125952  }
   0xb   : > { %844 = vmatprep.subr.bf16.mxu1 (!%p263_p3), %v951_v0  ;;  %846 = vmatprep.mubr.msk.bf16.mxu1 (!%p263_p3), %vm952_vm1, %v951_v0  ;;  %401 = vst.msk [vmem:[#allocation2] sm:$0xff] (!%p263_p3), %vm400_vm2, %v953_v3  ;;  %402 = vst.msk [vmem:[#allocation2 + $0x8] sm:$0xff] (!%p263_p3), %vm400_vm2, %v953_v3 }
   0xc   : > { %403 = vst.msk [vmem:[#allocation3] sm:$0xff] (!%p263_p3), %vm400_vm2, %v951_v0  ;;  %404 = vst.msk [vmem:[#allocation3 + $0x8] sm:$0xff] (!%p263_p3), %vm400_vm2, %v951_v0  ;;  %894 = vset.pattern.permute.xlu1 (!%p263_p3), %v954_v13  ;;  %895 = vset.pattern.permute.xlu0 (!%p263_p3), %v954_v13 }
  0x10   : > { %s1080_s16 = smov (!%p336_p5, %s937_s16), 1  ;;  %s1082_s15 = smov (!%p338_p6, %s933_s15), 1 }
  0x11   : > { %s811_s22 = sshll.u32 %s1080_s16, 2  ;;  %s810_s23 = sshll.u32 %s1082_s15, 1  ;;  %v524_v50 = vld [vmem:[#allocation4] sm:$0xff]  ;;  %v525_v52 = vld [vmem:[#allocation4 + $0x8] sm:$0xff] }
  0x12   : > { %s345_s24 = sadd.s32 %s811_s22, %s810_s23  ;;  %s380_s8 = scalar_lea.vmem %s1067_s3, %s1080_s16  ;;  %v477_v14 = vld [vmem:[#allocation2] sm:$0xff]  ;;  %v478_v17 = vld [vmem:[#allocation2 + $0x8] sm:$0xff] }
  0x13   : > { %s1012_s25 = sshll.u32 %s345_s24, 2  ;;  %v822_v4 = vld [vmem:[%s380_s8] ss:$0 sm:$0xff]  ;;  %v509_v38 = vld [vmem:[#allocation3] sm:$0xff]  ;;  %v510_v41 = vld [vmem:[#allocation3 + $0x8] sm:$0xff] }
  0x14   : > { %s360_s28 = scalar_lea.vmem %s1065_s1, %s1012_s25  ;;  %s347_s5 = scalar_lea.vmem %s1064_s0, %s1012_s25 }
  0x15   : > { %v896_v1 = vld [vmem:[%s360_s28] sm:$0xff]   ;;  %s373_s11 = scalar_lea.vmem %s1066_s2, %s1012_s25  ;;  %s393_s14 = scalar_lea.vmem %s1068_s4, %s1012_s25 }
  0x16   : > { %v897_v2 = vld [vmem:[%s347_s5] sm:$0xff]   ;;  %839 = vmatpush3.bf16.msra.mxu0 %v896_v1 }
  0x17   : > { %v898_v22 = vld [vmem:[%s373_s11] sm:$0xff]  }
  0x18   : > { %845 = vmatpush3.bf16.msra.mxu1 %v898_v22 }
  0x19   : > { %841 = vmatmul.mubr.msk.bf16.vlgmr.msra.gmra.mrb[0].mxu0 %vm405_vm0, %v897_v2 }
  0xec   : > { %v470_v5 = vpop.f32.mrb[0].mxu0 }
  0xed   : > { %v471_v6 = vadd.f32 %v822_v4, %v470_v5  ;;  %v842_v7 = vpop.f32.mrb[1].mxu0 }
  0xee   : > { %v473_v8 = vpop.f32.mrb[2].mxu0 }
  0xef   : > { %v474_v9 = vadd.f32 %v822_v4, %v473_v8  ;;  %v843_v10 = vpop.f32.mrb[3].mxu0  ;;  %v479_v11 = vsel %vm405_vm0, %v471_v6, -inf }
  0xf0   : > { %480 = vmax.xlane.f32.xlu0 %v479_v11 }
  0xf1   : > { %v482_v12 = vsel %vm405_vm0, %v474_v9, -inf }
  0xf4   : > { %483 = vmax.xlane.f32.xlu0 %v482_v12 }
 0x17d   : > { %v481_v15 = vpop.xlane.xlu0 %480 }
 0x17e   : > { %v485_v16 = vmax.f32 %v477_v14, %v481_v15 }
 0x180   : > { %v487_v18 = vsub.f32 %v477_v14, %v485_v16  ;;  %593 = vst.msk [vmem:[#allocation2] sm:$0xff] %vm400_vm2, %v485_v16  ;;  %495 = vperm.xlu1 %894, %v485_v16  }
 0x181   : > { %v484_v19 = vpop.xlane.xlu0 %483 }
 0x182   : > { %v486_v20 = vmax.f32 %v478_v17, %v484_v19  ;;  %v489_v35 = vmul.f32 1.442695, %v487_v18 }
 0x184   : > { %v488_v21 = vsub.f32 %v478_v17, %v486_v20  ;;  %594 = vst.msk [vmem:[#allocation2 + $0x8] sm:$0xff] %vm400_vm2, %v486_v20  ;;  %500 = vperm.xlu1 %894, %v486_v20  }
 0x186   : > { %v491_v34 = vmul.f32 1.442695, %v488_v21 }
 0x1ff   : > { %v496_v23 = vpop.permute.xlu1 %495 }
 0x200   : > { %v503_v24 = vsub.f32 %v471_v6, %v496_v23 }
 0x202   : > { %v505_v25 = vmul.f32 1.442695, %v503_v24 }
 0x203   : > { %v501_v26 = vpop.permute.xlu1 %500 }
 0x204   : > { %899 = vpow2.f32 %v505_v25  ;;  %v504_v27 = vsub.f32 %v474_v9, %v501_v26 }
 0x206   : > { %v507_v28 = vmul.f32 1.442695, %v504_v27 }
 0x208   : > { %901 = vpow2.f32 %v507_v28 }
 0x209   : > { %903 = vpow2.f32 %v491_v34 }
 0x20a   : > { %905 = vpow2.f32 %v489_v35 }
 0x20e   : > { %v900_v29 = vpop.eup %899 }
 0x20f   : > { %v513_v30 = vsel %vm405_vm0, %v900_v29, 0.0 }
 0x210   : > { %514 = vadd.xlane.f32.xlu0 %v513_v30 }
 0x212   : > { %v902_v31 = vpop.eup %901 }
 0x213   : > { %v516_v32 = vsel %vm405_vm0, %v902_v31, 0.0  ;;  %v538_v33 = vpack.c.bf16 %v902_v31, %v900_v29  ;;  %v904_v36 = vpop.eup %903 }
 0x214   : > { %517 = vadd.xlane.f32.xlu1 %v516_v32  ;;  %v906_v37 = vpop.eup %905  ;;  %v512_v43 = vmul.f32 %v904_v36, %v510_v41 }
 0x215   : > { %847 = vmatmul.mubr.msk.bf16.vlgmr.msra.gmra.mrb[0].mxu1 %vm405_vm0, %v538_v33  ;;  %v511_v39 = vmul.f32 %v906_v37, %v509_v38 }
 0x225   : > { %533 = vperm.xlu1 %894, %v904_v36  }
 0x226   : > { %528 = vperm.xlu0 %895, %v906_v37  }
 0x29d   : > { %v515_v40 = vpop.xlane.xlu0 %514 }
 0x29e   : > { %v519_v42 = vadd.f32 %v515_v40, %v511_v39 }
 0x2a0   : > { %522 = vst.msk [vmem:[#allocation3] sm:$0xff] %vm400_vm2, %v519_v42 }
 0x2a1   : > { %v518_v44 = vpop.xlane.xlu1 %517 }
 0x2a2   : > { %v520_v45 = vadd.f32 %v518_v44, %v512_v43 }
 0x2a4   : > { %523 = vst.msk [vmem:[#allocation3 + $0x8] sm:$0xff] %vm400_vm2, %v520_v45 }
 0x2a5   : > { %v529_v51 = vpop.permute.xlu0 %528  ;;  %v534_v53 = vpop.permute.xlu1 %533 }
 0x2a6   : > { %v536_v54 = vmul.f32 %v529_v51, %v524_v50  ;;  %v537_v56 = vmul.f32 %v534_v53, %v525_v52 }
 0x2a7   : > { %v600_v46 = vld [vmem:[#allocation3] sm:$0xff] }
 0x2a8   : > { %907 = vrcp.f32 %v600_v46 }
 0x2ab   : > { %v601_v47 = vld [vmem:[#allocation3 + $0x8] sm:$0xff] }
 0x2ac   : > { %909 = vrcp.f32 %v601_v47 }
 0x2b2   : > { %v908_v48 = vpop.eup %907 }
 0x2b3   : > { %606 = vperm.xlu0 %895, %v908_v48  }
 0x2b6   : > { %v910_v49 = vpop.eup %909 }
 0x2b7   : > { %611 = vperm.xlu0 %895, %v910_v49  }
 0x2e8   : > { %v582_v55 = vpop.f32.mrb[0].mxu1 }
 0x2e9   : > { %v589_v57 = vadd.f32 %v582_v55, %v536_v54  ;;  %v848_v58 = vpop.f32.mrb[1].mxu1 }
 0x2ea   : > { %v585_v59 = vpop.f32.mrb[2].mxu1 }
 0x2eb   : > { %591 = vst.msk [vmem:[#allocation4] sm:$0xff] %vm405_vm0, %v589_v57  ;;  %v590_v60 = vadd.f32 %v585_v59, %v537_v56  ;;  %v849_v61 = vpop.f32.mrb[3].mxu1 }
 0x2ed   : > { %592 = vst.msk [vmem:[#allocation4 + $0x8] sm:$0xff] %vm405_vm0, %v590_v60 }
 0x2f2   : > { %v598_v62 = vld [vmem:[#allocation4] sm:$0xff] }
 0x2f4   : > { %v599_v2 = vld [vmem:[#allocation4 + $0x8] sm:$0xff] }
 0x332   : > { %v607_v63 = vpop.permute.xlu0 %606 }
 0x333   : > { %v614_v0 = vmul.f32 %v607_v63, %v598_v62 }
 0x335   : > { %v832_v1 = vpack.c.bf16 %v614_v0, %v614_v0 }
 0x336   : > { %v612_v3 = vpop.permute.xlu0 %611 }
 0x337   : > { %625 = vst.msk [vmem:[%s393_s14] sm:$0xf] %vm624_vm3, %v832_v1  ;;  %v615_v4 = vmul.f32 %v612_v3, %v599_v2 }
 0x339   : > { %v833_v5 = vpack.c.bf16 %v615_v4, %v615_v4 }
 0x33b   : > { %626 = vst.msk [vmem:[%s393_s14 + $0x4] sm:$0xf] %vm624_vm3, %v833_v5 }
 0x33c PF: > { %s14_s19 = sadd.s32 1, %s949_s19   ;;  %s1069_s15 = smov %s941_s17 }
 0x33d   : > { %p11_p7 = scmp.ge.s32.totalorder %s14_s19, 6   ;;  %s1070_s16 = smov %s945_s18 }
 0x33e   : > { %s1071_s17 = smov %s1074_s20  ;;  %s1072_s18 = smov %s1078_s21 }
 0x33f   :  { %13 = sbr.rel (!%p11_p7) target bundleno = 3 (0x3), region = 83 }

// kernel: reformer_mlm_forward.13
= control target key start
LH: loop header
LB: loop body
LE: loop exit
PB: predicated region body
PF: predicated region fallthrough
CT: control target
= control target key end

     0   :  { %vm19_vm0 = vcmask 261120   ;;  %v206_v1 = vmov 0.0   ;;  %vm157_vm1 = vcmask 257024   ;;  %s267_s1 = inlined_call_operand.vmem [shape: bf16[32,32], index: 1, kind: input, shape index: {}]   ;;  %s268_s0 = inlined_call_operand.vmem [shape: bf16[32,32], index: 0, kind: input, shape index: {}]   ;;  %s269_s2 = inlined_call_operand.vmem [shape: bf16[32,32], index: 2, kind: input, shape index: {}]   ;;  %s270_s3 = inlined_call_operand.vmem [shape: bf16[32,32], index: 3, kind: output, shape index: {}]  }
   0x1   :  { %v202_v0 = vld [vmem:[%s267_s1] sm:$0xff]   ;;  %22 = vst.msk [vmem:[#allocation2 + $0x10] sm:$0xff] %vm19_vm0, %v206_v1  ;;  %20 = vst.msk [vmem:[#allocation2] sm:$0xff] %vm19_vm0, %v206_v1  ;;  %v203_v2 = vld [vmem:[%s267_s1 + $0x8] sm:$0xff]  }
   0x2   :  { %21 = vst.msk [vmem:[#allocation2 + $0x8] sm:$0xff] %vm19_vm0, %v206_v1  ;;  %23 = vst.msk [vmem:[#allocation2 + $0x18] sm:$0xff] %vm19_vm0, %v206_v1  ;;  %193 = vmatprep.subr.bf16.mxu0 %v202_v0  ;;  %v204_v3 = vld [vmem:[%s268_s0] sm:$0xff]   ;;  %v205_v4 = vld [vmem:[%s268_s0 + $0x8] sm:$0xff]  }
   0x3   :  { %194 = vmatpush3.bf16.msra.mxu0 %v202_v0  ;;  %197 = vmatprep.mubr.msk.bf16.mxu0 %vm19_vm0, %v204_v3  ;;  %v188_v16 = vld [vmem:[%s269_s2 + $0x8] sm:$0xff]   ;;  %v181_v18 = vld [vmem:[%s269_s2] sm:$0xff]  }
   0x4   :  { %195 = vmatprep.subr.bf16.mxu0 %v203_v2  ;;  %v186_v19 = vunpack.c.l.bf16 %v188_v16  ;;  %v182_v20 = vunpack.c.l.bf16 %v181_v18  ;;  %v187_v21 = vunpack.c.h.bf16 %v188_v16  ;;  %v183_v23 = vunpack.c.h.bf16 %v181_v18 }
   0x7   :  { %196 = vmatpush3.bf16.msra.mxu0 %v203_v2 }
   0x8   :  { %v34_v5 = vld [vmem:[#allocation2 + $0x10] sm:$0xff]  ;;  %v32_v6 = vld [vmem:[#allocation2] sm:$0xff] }
   0x9   :  { %v35_v8 = vld [vmem:[#allocation2 + $0x18] sm:$0xff]  ;;  %v33_v11 = vld [vmem:[#allocation2 + $0x8] sm:$0xff] }
   0xa   :  { %198 = vmatmul.mubr.msk.bf16.vlgmr.msra.gmra.mrb[0].mxu0 %vm19_vm0, %v205_v4 }
  0xdd   :  { %v199_v7 = vpop.f32.mrb[0].mxu0 }
  0xde   :  { %v116_v9 = vadd.f32 %v199_v7, %v34_v5  ;;  %v99_v10 = vpop.f32.mrb[1].mxu0 }
  0xdf   :  { %v114_v12 = vadd.f32 %v99_v10, %v32_v6  ;;  %v200_v13 = vpop.f32.mrb[2].mxu0 }
  0xe0   :  { %120 = vst.msk [vmem:[#allocation2 + $0x10] sm:$0xff] %vm19_vm0, %v116_v9  ;;  %v117_v14 = vadd.f32 %v200_v13, %v35_v8  ;;  %v102_v15 = vpop.f32.mrb[3].mxu0 }
  0xe1   :  { %118 = vst.msk [vmem:[#allocation2] sm:$0xff] %vm19_vm0, %v114_v12  ;;  %v115_v17 = vadd.f32 %v102_v15, %v33_v11 }
  0xe2   :  { %121 = vst.msk [vmem:[#allocation2 + $0x18] sm:$0xff] %vm19_vm0, %v117_v14 }
  0xe3   :  { %119 = vst.msk [vmem:[#allocation2 + $0x8] sm:$0xff] %vm19_vm0, %v115_v17 }
  0xe7   :  { %v127_v22 = vld [vmem:[#allocation2 + $0x10] sm:$0xff] }
  0xe8   :  { %v139_v24 = vadd.f32 %v186_v19, %v127_v22  ;;  %v125_v25 = vld [vmem:[#allocation2] sm:$0xff] }
  0xe9   :  { %v137_v26 = vadd.f32 %v182_v20, %v125_v25  ;;  %v128_v27 = vld [vmem:[#allocation2 + $0x18] sm:$0xff] }
  0xea   :  { %v178_v28 = vpack.c.bf16 %v139_v24, %v139_v24  ;;  %v140_v29 = vadd.f32 %v187_v21, %v128_v27  ;;  %v126_v30 = vld [vmem:[#allocation2 + $0x8] sm:$0xff] }
  0xeb   :  { %v176_v31 = vpack.c.bf16 %v137_v26, %v137_v26  ;;  %v138_v32 = vadd.f32 %v183_v23, %v126_v30 }
  0xec   :  { %160 = vst.msk [vmem:[%s270_s3 + $0x8] sm:$0xf] %vm157_vm1, %v178_v28  ;;  %v179_v33 = vpack.c.bf16 %v140_v29, %v140_v29 }
  0xed   :  { %158 = vst.msk [vmem:[%s270_s3] sm:$0xf] %vm157_vm1, %v176_v31  ;;  %v177_v34 = vpack.c.bf16 %v138_v32, %v138_v32 }
  0xee   :  { %161 = vst.msk [vmem:[%s270_s3 + $0xc] sm:$0xf] %vm157_vm1, %v179_v33 }
  0xef   :  { %159 = vst.msk [vmem:[%s270_s3 + $0x4] sm:$0xf] %vm157_vm1, %v177_v34 }

// kernel: reformer_mlm_forward.14
= control target key start
LH: loop header
LB: loop body
LE: loop exit
PB: predicated region body
PF: predicated region fallthrough
CT: control target
= control target key end

     0   :  { %vm29_vm0 = vcmask 261120   ;;  %vm205_vm1 = vcmask 519168   ;;  %s333_s0 = inlined_call_operand.vmem [shape: bf16[32,32], index: 0, kind: input, shape index: {}]   ;;  %s334_s3 = inlined_call_operand.vmem [shape: bf16[32,64], index: 3, kind: input, shape index: {}]   ;;  %s335_s1 = inlined_call_operand.vmem [shape: f32[1,32], index: 1, kind: input, shape index: {}]   ;;  %s336_s2 = inlined_call_operand.vmem [shape: f32[1,32], index: 2, kind: input, shape index: {}]   ;;  %s337_s4 = inlined_call_operand.vmem [shape: f32[1,64], index: 4, kind: input, shape index: {}]   ;;  %s338_s5 = inlined_call_operand.vmem [shape: bf16[32,64], index: 5, kind: output, shape index: {}]  }
   0x1   :  { %v230_v0 = vld [vmem:[%s333_s0] sm:$0xff]   ;;  %v237_v1 = vld [vmem:[%s333_s0 + $0x8] sm:$0xff]  }
   0x2   :  { %v231_v2 = vunpack.c.l.bf16 %v230_v0  ;;  %v235_v3 = vunpack.c.l.bf16 %v237_v1  ;;  %v232_v4 = vunpack.c.h.bf16 %v230_v0  ;;  %v236_v5 = vunpack.c.h.bf16 %v237_v1  ;;  %v250_v30 = vld [vmem:[%s334_s3] sm:$0xff]   ;;  %v251_v31 = vld [vmem:[%s334_s3 + $0x8] sm:$0xff]  }
   0x3   :  { %242 = vmatprep.subr.bf16.mxu0 %v250_v30  ;;  %v214_v46 = vld [vmem:[%s335_s1] ss:$0 sm:$0xff] }
   0x4   :  { %v30_v6 = vsel %vm29_vm0, %v231_v2, 0.0  ;;  %v36_v7 = vsel %vm29_vm0, %v235_v3, 0.0  ;;  %v33_v8 = vsel %vm29_vm0, %v232_v4, 0.0  ;;  %v39_v9 = vsel %vm29_vm0, %v236_v5, 0.0  ;;  %243 = vmatpush3.bf16.msra.mxu0 %v250_v30  ;;  %v215_v52 = vld [vmem:[%s336_s2] ss:$0 sm:$0xff] }
   0x5   :  { %31 = vadd.xlane.f32.xlu0 %v30_v6  ;;  %37 = vadd.xlane.f32.xlu1 %v36_v7  ;;  %v216_v0 = vld [vmem:[%s337_s4] ss:$0 sm:$0xff] }
   0x6   :  { %244 = vmatprep.subr.bf16.mxu0 %v251_v31 }
   0x8   :  { %245 = vmatpush3.bf16.msra.mxu0 %v251_v31 }
   0x9   :  { %34 = vadd.xlane.f32.xlu0 %v33_v8  ;;  %40 = vadd.xlane.f32.xlu1 %v39_v9 }
  0x92   :  { %v32_v10 = vpop.xlane.xlu0 %31  ;;  %v38_v11 = vpop.xlane.xlu1 %37 }
  0x93   :  { %v43_v12 = vmul.f32 0.03125, %v32_v10  ;;  %v45_v13 = vmul.f32 0.03125, %v38_v11 }
  0x95   :  { %v47_v14 = vsub.f32 %v231_v2, %v43_v12  ;;  %v49_v15 = vsub.f32 %v235_v3, %v45_v13 }
  0x96   :  { %v35_v16 = vpop.xlane.xlu0 %34  ;;  %v41_v17 = vpop.xlane.xlu1 %40 }
  0x97   :  { %v44_v18 = vmul.f32 0.03125, %v35_v16  ;;  %v46_v19 = vmul.f32 0.03125, %v41_v17  ;;  %v51_v20 = vmul.f32 %v47_v14, %v47_v14  ;;  %v53_v21 = vmul.f32 %v49_v15, %v49_v15 }
  0x99   :  { %v48_v22 = vsub.f32 %v232_v4, %v44_v18  ;;  %v50_v23 = vsub.f32 %v236_v5, %v46_v19  ;;  %v55_v24 = vsel %vm29_vm0, %v51_v20, 0.0  ;;  %v61_v25 = vsel %vm29_vm0, %v53_v21, 0.0 }
  0x9a   :  { %56 = vadd.xlane.f32.xlu0 %v55_v24 }
  0x9b   :  { %v52_v26 = vmul.f32 %v48_v22, %v48_v22  ;;  %v54_v27 = vmul.f32 %v50_v23, %v50_v23 }
  0x9d   :  { %v58_v28 = vsel %vm29_vm0, %v52_v26, 0.0  ;;  %v64_v29 = vsel %vm29_vm0, %v54_v27, 0.0 }
  0x9e   :  { %62 = vadd.xlane.f32.xlu0 %v61_v25  ;;  %59 = vadd.xlane.f32.xlu1 %v58_v28 }
  0xa2   :  { %65 = vadd.xlane.f32.xlu1 %v64_v29 }
 0x127   :  { %v57_v32 = vpop.xlane.xlu0 %56 }
 0x128   :  { %v67_v33 = vmul.f32 0.03125, %v57_v32 }
 0x12a   :  { %v71_v34 = vadd.f32 1e-12, %v67_v33 }
 0x12b   :  { %v60_v35 = vpop.xlane.xlu1 %59  ;;  %v63_v36 = vpop.xlane.xlu0 %62 }
 0x12c   :  { %252 = vrsqrt.f32 %v71_v34  ;;  %v68_v37 = vmul.f32 0.03125, %v60_v35  ;;  %v69_v38 = vmul.f32 0.03125, %v63_v36 }
 0x12e   :  { %v72_v39 = vadd.f32 1e-12, %v68_v37  ;;  %v73_v40 = vadd.f32 1e-12, %v69_v38 }
 0x12f   :  { %v66_v41 = vpop.xlane.xlu1 %65 }
 0x130   :  { %254 = vrsqrt.f32 %v72_v39  ;;  %v70_v42 = vmul.f32 0.03125, %v66_v41 }
 0x131   :  { %256 = vrsqrt.f32 %v73_v40 }
 0x132   :  { %v74_v43 = vadd.f32 1e-12, %v70_v42 }
 0x134   :  { %258 = vrsqrt.f32 %v74_v43 }
 0x136   :  { %v253_v44 = vpop.eup %252 }
 0x137   :  { %v79_v45 = vmul.f32 %v253_v44, %v47_v14 }
 0x139   :  { %v90_v50 = vmul.f32 %v214_v46, %v79_v45 }
 0x13a   :  { %v255_v47 = vpop.eup %254 }
 0x13b   :  { %v257_v48 = vpop.eup %256  ;;  %v80_v49 = vmul.f32 %v255_v47, %v48_v22  ;;  %v101_v56 = vadd.f32 %v215_v52, %v90_v50 }
 0x13c   :  { %v81_v51 = vmul.f32 %v257_v48, %v49_v15 }
 0x13d   :  { %v91_v53 = vmul.f32 %v214_v46, %v80_v49 }
 0x13e   :  { %v259_v54 = vpop.eup %258  ;;  %v92_v58 = vmul.f32 %v214_v46, %v81_v51 }
 0x13f   :  { %v82_v55 = vmul.f32 %v259_v54, %v50_v23  ;;  %v102_v57 = vadd.f32 %v215_v52, %v91_v53 }
 0x140   :  { %v103_v61 = vadd.f32 %v215_v52, %v92_v58 }
 0x141   :  { %v105_v59 = vpack.c.bf16 %v102_v57, %v101_v56  ;;  %v93_v60 = vmul.f32 %v214_v46, %v82_v55 }
 0x143   :  { %246 = vmatprep.mubr.msk.bf16.mxu0 %vm29_vm0, %v105_v59  ;;  %v104_v62 = vadd.f32 %v215_v52, %v93_v60 }
 0x145   :  { %v106_v63 = vpack.c.bf16 %v104_v62, %v103_v61 }
 0x147   :  { %247 = vmatmul.mubr.msk.bf16.vlgmr.msra.gmra.mrb[0].mxu0 %vm29_vm0, %v106_v63 }
 0x21a   :  { %v248_v1 = vpop.f32.mrb[0].mxu0 }
 0x21b   :  { %v179_v2 = vadd.f32 %v248_v1, %v216_v0  ;;  %v170_v3 = vpop.f32.mrb[1].mxu0 }
 0x21c   :  { %v171_v4 = vadd.f32 %v216_v0, %v170_v3  ;;  %v249_v5 = vpop.f32.mrb[2].mxu0 }
 0x21d   :  { %v187_v6 = vmax.f32 %v179_v2, 0.0  ;;  %v182_v7 = vadd.f32 %v249_v5, %v216_v0  ;;  %v173_v8 = vpop.f32.mrb[3].mxu0 }
 0x21e   :  { %v185_v9 = vmax.f32 %v171_v4, 0.0  ;;  %v174_v10 = vadd.f32 %v216_v0, %v173_v8 }
 0x21f   :  { %v227_v11 = vpack.c.bf16 %v187_v6, %v187_v6  ;;  %v188_v12 = vmax.f32 %v182_v7, 0.0 }
 0x220   :  { %v225_v13 = vpack.c.bf16 %v185_v9, %v185_v9  ;;  %v186_v14 = vmax.f32 %v174_v10, 0.0 }
 0x221   :  { %208 = vst.msk [vmem:[%s338_s5 + $0x8] sm:$0xf] %vm205_vm1, %v227_v11  ;;  %v228_v15 = vpack.c.bf16 %v188_v12, %v188_v12 }
 0x222   :  { %206 = vst.msk [vmem:[%s338_s5] sm:$0xf] %vm205_vm1, %v225_v13  ;;  %v226_v16 = vpack.c.bf16 %v186_v14, %v186_v14 }
 0x223   :  { %209 = vst.msk [vmem:[%s338_s5 + $0xc] sm:$0xf] %vm205_vm1, %v228_v15 }
 0x224   :  { %207 = vst.msk [vmem:[%s338_s5 + $0x4] sm:$0xf] %vm205_vm1, %v226_v16 }

// kernel: reformer_mlm_forward.15
= control target key start
LH: loop header
LB: loop body
LE: loop exit
PB: predicated region body
PF: predicated region fallthrough
CT: control target
= control target key end

     0   :  { %vm22_vm0 = vcmask 261120   ;;  %v248_v1 = vmov 0.0   ;;  %vm77_vm1 = vcmask 523264   ;;  %vm188_vm2 = vcmask 257024   ;;  %s321_s1 = inlined_call_operand.vmem [shape: bf16[64,32], index: 1, kind: input, shape index: {}]   ;;  %s322_s0 = inlined_call_operand.vmem [shape: bf16[32,64], index: 0, kind: input, shape index: {}]   ;;  %s323_s3 = inlined_call_operand.vmem [shape: bf16[32,32], index: 3, kind: input, shape index: {}]   ;;  %s324_s2 = inlined_call_operand.vmem [shape: f32[1,32], index: 2, kind: input, shape index: {}]   ;;  %s325_s4 = inlined_call_operand.vmem [shape: bf16[32,32], index: 4, kind: output, shape index: {}]  }
   0x1   :  { %v242_v0 = vld [vmem:[%s321_s1] sm:$0xff]   ;;  %25 = vst.msk [vmem:[#allocation2 + $0x10] sm:$0xff] %vm22_vm0, %v248_v1  ;;  %23 = vst.msk [vmem:[#allocation2] sm:$0xff] %vm22_vm0, %v248_v1  ;;  %v243_v2 = vld [vmem:[%s321_s1 + $0x8] sm:$0xff]  }
   0x2   :  { %24 = vst.msk [vmem:[#allocation2 + $0x8] sm:$0xff] %vm22_vm0, %v248_v1  ;;  %26 = vst.msk [vmem:[#allocation2 + $0x18] sm:$0xff] %vm22_vm0, %v248_v1  ;;  %229 = vmatprep.subr.bf16.mxu0 %v242_v0  ;;  %v244_v3 = vld [vmem:[%s321_s1 + $0x10] sm:$0xff]   ;;  %v246_v4 = vld [vmem:[%s322_s0] sm:$0xff]  }
   0x3   :  { %230 = vmatpush3.bf16.msra.mxu0 %v242_v0  ;;  %237 = vmatprep.mubr.msk.bf16.mxu0 %vm77_vm1, %v246_v4  ;;  %v245_v5 = vld [vmem:[%s321_s1 + $0x18] sm:$0xff]   ;;  %v247_v6 = vld [vmem:[%s322_s0 + $0x8] sm:$0xff]   ;;  %v215_v20 = vld [vmem:[%s323_s3] sm:$0xff]  }
   0x4   :  { %231 = vmatprep.subr.bf16.mxu0 %v243_v2  ;;  %v222_v19 = vld [vmem:[%s323_s3 + $0x8] sm:$0xff]   ;;  %v205_v21 = vld [vmem:[%s324_s2] ss:$0 sm:$0xff]  ;;  %v216_v24 = vunpack.c.l.bf16 %v215_v20  ;;  %v217_v30 = vunpack.c.h.bf16 %v215_v20 }
   0x5   :  { %v220_v22 = vunpack.c.l.bf16 %v222_v19  ;;  %v221_v27 = vunpack.c.h.bf16 %v222_v19 }
   0x7   :  { %232 = vmatpush3.bf16.msra.mxu0 %v243_v2 }
   0x8   :  { %233 = vmatprep.subr.bf16.mxu0 %v244_v3  ;;  %v41_v7 = vld [vmem:[#allocation2 + $0x10] sm:$0xff]  ;;  %v39_v8 = vld [vmem:[#allocation2] sm:$0xff] }
   0x9   :  { %v42_v10 = vld [vmem:[#allocation2 + $0x18] sm:$0xff]  ;;  %v40_v13 = vld [vmem:[#allocation2 + $0x8] sm:$0xff] }
   0xb   :  { %234 = vmatpush3.bf16.msra.mxu0 %v244_v3 }
   0xc   :  { %235 = vmatprep.subr.bf16.mxu0 %v245_v5 }
   0xf   :  { %236 = vmatpush3.bf16.msra.mxu0 %v245_v5 }
  0x12   :  { %238 = vmatmul.mubr.msk.bf16.vlgmr.msra.gmra.mrb[0].mxu0 %vm77_vm1, %v247_v6 }
  0xe5   :  { %v239_v9 = vpop.f32.mrb[0].mxu0 }
  0xe6   :  { %v135_v11 = vadd.f32 %v239_v9, %v41_v7  ;;  %v118_v12 = vpop.f32.mrb[1].mxu0 }
  0xe7   :  { %v133_v14 = vadd.f32 %v118_v12, %v39_v8  ;;  %v240_v15 = vpop.f32.mrb[2].mxu0 }
  0xe8   :  { %140 = vst.msk [vmem:[#allocation2 + $0x10] sm:$0xff] %vm22_vm0, %v135_v11  ;;  %v136_v16 = vadd.f32 %v240_v15, %v42_v10  ;;  %v121_v17 = vpop.f32.mrb[3].mxu0 }
  0xe9   :  { %138 = vst.msk [vmem:[#allocation2] sm:$0xff] %vm22_vm0, %v133_v14  ;;  %v134_v18 = vadd.f32 %v121_v17, %v40_v13 }
  0xea   :  { %141 = vst.msk [vmem:[#allocation2 + $0x18] sm:$0xff] %vm22_vm0, %v136_v16 }
  0xeb   :  { %139 = vst.msk [vmem:[#allocation2 + $0x8] sm:$0xff] %vm22_vm0, %v134_v18 }
  0xef   :  { %v147_v23 = vld [vmem:[#allocation2 + $0x10] sm:$0xff] }
  0xf0   :  { %v158_v25 = vadd.f32 %v205_v21, %v147_v23  ;;  %v145_v26 = vld [vmem:[#allocation2] sm:$0xff] }
  0xf1   :  { %v156_v28 = vadd.f32 %v205_v21, %v145_v26  ;;  %v148_v29 = vld [vmem:[#allocation2 + $0x18] sm:$0xff] }
  0xf2   :  { %v170_v31 = vadd.f32 %v220_v22, %v158_v25  ;;  %v159_v32 = vadd.f32 %v205_v21, %v148_v29  ;;  %v146_v33 = vld [vmem:[#allocation2 + $0x8] sm:$0xff] }
  0xf3   :  { %v168_v34 = vadd.f32 %v216_v24, %v156_v28  ;;  %v157_v35 = vadd.f32 %v205_v21, %v146_v33 }
  0xf4   :  { %v212_v36 = vpack.c.bf16 %v170_v31, %v170_v31  ;;  %v171_v37 = vadd.f32 %v221_v27, %v159_v32 }
  0xf5   :  { %v210_v38 = vpack.c.bf16 %v168_v34, %v168_v34  ;;  %v169_v39 = vadd.f32 %v217_v30, %v157_v35 }
  0xf6   :  { %191 = vst.msk [vmem:[%s325_s4 + $0x8] sm:$0xf] %vm188_vm2, %v212_v36  ;;  %v213_v40 = vpack.c.bf16 %v171_v37, %v171_v37 }
  0xf7   :  { %189 = vst.msk [vmem:[%s325_s4] sm:$0xf] %vm188_vm2, %v210_v38  ;;  %v211_v41 = vpack.c.bf16 %v169_v39, %v169_v39 }
  0xf8   :  { %192 = vst.msk [vmem:[%s325_s4 + $0xc] sm:$0xf] %vm188_vm2, %v213_v40 }
  0xf9   :  { %190 = vst.msk [vmem:[%s325_s4 + $0x4] sm:$0xf] %vm188_vm2, %v211_v41 }

// kernel: reformer_mlm_forward.21
= control target key start
LH: loop header
LB: loop body
LE: loop exit
PB: predicated region body
PF: predicated region fallthrough
CT: control target
= control target key end

     0   :  { %vm53_vm0 = vcmask 261120   ;;  %s663_s1 = inlined_call_operand.vmem [shape: bf16[32,32], index: 1, kind: input, shape index: {}]   ;;  %s664_s0 = inlined_call_operand.vmem [shape: bf16[32,32], index: 0, kind: input, shape index: {}]   ;;  %s665_s7 = inlined_call_operand.vmem [shape: bf16[32,256], index: 7, kind: input, shape index: {}]   ;;  %s666_s6 = inlined_call_operand.vmem [shape: bf16[32,256], index: 6, kind: input, shape index: {}]   ;;  %s667_s2 = inlined_call_operand.vmem [shape: f32[1,32], index: 2, kind: input, shape index: {}]   ;;  %s668_s3 = inlined_call_operand.vmem [shape: f32[1,32], index: 3, kind: input, shape index: {}]   ;;  %s669_s4 = inlined_call_operand.vmem [shape: f32[1,32], index: 4, kind: input, shape index: {}]   ;;  %s670_s5 = inlined_call_operand.vmem [shape: f32[1,32], index: 5, kind: input, shape index: {}]   ;;  %s671_s8 = inlined_call_operand.vmem [shape: f32[1,256], index: 8, kind: input, shape index: {}]   ;;  %s672_s9 = inlined_call_operand.vmem [shape: f32[32,256], index: 9, kind: output, shape index: {}]  }
   0x1   :  { %v431_v0 = vld [vmem:[%s663_s1] sm:$0xff]   ;;  %v438_v6 = vld [vmem:[%s664_s0 + $0x8] sm:$0xff]  }
   0x2   :  { %v423_v1 = vld [vmem:[%s664_s0] sm:$0xff]   ;;  %v432_v2 = vunpack.c.l.bf16 %v431_v0  ;;  %v433_v4 = vunpack.c.h.bf16 %v431_v0  ;;  %v429_v11 = vunpack.c.h.bf16 %v438_v6  ;;  %v428_v12 = vunpack.c.l.bf16 %v438_v6  ;;  %v439_v13 = vld [vmem:[%s663_s1 + $0x8] sm:$0xff]   ;;  %v455_v0 = vld [vmem:[%s665_s7 + $0x14] ss:$8 sps:$4 sm:$0xff]  }
   0x3   :  { %v424_v3 = vunpack.c.l.bf16 %v423_v1  ;;  %v425_v5 = vunpack.c.h.bf16 %v423_v1  ;;  %v437_v16 = vunpack.c.h.bf16 %v439_v13  ;;  %v436_v17 = vunpack.c.l.bf16 %v439_v13  ;;  %v449_v60 = vld [vmem:[%s665_s7 + $0x4] ss:$8 sps:$4 sm:$0xff]   ;;  %v453_v62 = vld [vmem:[%s665_s7] ss:$8 sps:$4 sm:$0xff]   ;;  %v457_v1 = vld [vmem:[%s666_s6 + $0x14] ss:$8 sps:$4 sm:$0xff]  }
   0x4   :  { %v66_v7 = vsel %vm53_vm0, %v432_v2, 0.0  ;;  %v69_v9 = vsel %vm53_vm0, %v433_v4, 0.0  ;;  %v63_v14 = vsel %vm53_vm0, %v429_v11, 0.0  ;;  %v60_v15 = vsel %vm53_vm0, %v428_v12, 0.0  ;;  %v451_v61 = vld [vmem:[%s666_s6 + $0x4] ss:$8 sps:$4 sm:$0xff]   ;;  %242 = vmatprep.subr.bf16.mxu1 %v449_v60 }
   0x5   :  { %v54_v8 = vsel %vm53_vm0, %v424_v3, 0.0  ;;  %67 = vadd.xlane.f32.xlu1 %v66_v7  ;;  %v57_v10 = vsel %vm53_vm0, %v425_v5, 0.0  ;;  %v75_v18 = vsel %vm53_vm0, %v437_v16, 0.0  ;;  %v72_v19 = vsel %vm53_vm0, %v436_v17, 0.0  ;;  %v454_v63 = vld [vmem:[%s666_s6] ss:$8 sps:$4 sm:$0xff]   ;;  %321 = vmatprep.subr.bf16.mxu0 %v451_v61 }
   0x6   :  { %55 = vadd.xlane.f32.xlu0 %v54_v8  ;;  %243 = vmatpush1.bf16.msra.mxu1 %v453_v62 }
   0x7   :  { %322 = vmatpush1.bf16.msra.mxu0 %v454_v63  ;;  %244 = vmatprep.subr.bf16.mxu1 %v455_v0 }
   0x8   :  { %323 = vmatprep.subr.bf16.mxu0 %v457_v1 }
   0x9   :  { %70 = vadd.xlane.f32.xlu1 %v69_v9 }
   0xa   :  { %58 = vadd.xlane.f32.xlu0 %v57_v10 }
   0xd   :  { %64 = vadd.xlane.f32.xlu1 %v63_v14 }
   0xe   :  { %61 = vadd.xlane.f32.xlu0 %v60_v15 }
  0x11   :  { %76 = vadd.xlane.f32.xlu1 %v75_v18 }
  0x12   :  { %73 = vadd.xlane.f32.xlu0 %v72_v19 }
  0x92   :  { %v68_v20 = vpop.xlane.xlu1 %67 }
  0x93   :  { %v56_v21 = vpop.xlane.xlu0 %55 }
  0x94   :  { %v78_v22 = vadd.f32 %v68_v20, %v56_v21 }
  0x96   :  { %v83_v23 = vmul.f32 0.015625, %v78_v22  ;;  %v71_v24 = vpop.xlane.xlu1 %70 }
  0x97   :  { %v59_v25 = vpop.xlane.xlu0 %58 }
  0x98   :  { %v540_v26 = vsub.f32 %v424_v3, %v83_v23  ;;  %v542_v27 = vsub.f32 %v432_v2, %v83_v23  ;;  %v79_v28 = vadd.f32 %v71_v24, %v59_v25  ;;  %v459_v2 = vld [vmem:[%s665_s7 + $0x10] ss:$8 sps:$4 sm:$0xff]  }
  0x99   :  { %v460_v3 = vld [vmem:[%s666_s6 + $0x10] ss:$8 sps:$4 sm:$0xff]   ;;  %245 = vmatpush1.bf16.msra.mxu1 %v459_v2 }
  0x9a   :  { %v84_v29 = vmul.f32 0.015625, %v79_v28  ;;  %v91_v30 = vmul.f32 %v540_v26, %v540_v26  ;;  %v65_v31 = vpop.xlane.xlu1 %64  ;;  %v111_v36 = vmul.f32 %v542_v27, %v542_v27  ;;  %324 = vmatpush1.bf16.msra.mxu0 %v460_v3 }
  0x9b   :  { %v62_v32 = vpop.xlane.xlu0 %61 }
  0x9c   :  { %v546_v33 = vsub.f32 %v425_v5, %v84_v29  ;;  %v548_v34 = vsub.f32 %v433_v4, %v84_v29  ;;  %v95_v35 = vsel %vm53_vm0, %v91_v30, 0.0  ;;  %v115_v43 = vsel %vm53_vm0, %v111_v36, 0.0  ;;  %v406_v30 = vld [vmem:[%s667_s2] ss:$0 sm:$0xff] }
  0x9d   :  { %96 = vadd.xlane.f32.xlu0 %v95_v35  ;;  %v469_v4 = vmov 0  }
  0x9e   :  { %v92_v37 = vmul.f32 %v546_v33, %v546_v33  ;;  %v77_v38 = vpop.xlane.xlu1 %76  ;;  %v112_v40 = vmul.f32 %v548_v34, %v548_v34  ;;  %274 = vmatprep.mubr.bf16.mxu1 %v469_v4  ;;  %353 = vmatprep.mubr.bf16.mxu0 %v469_v4 }
  0x9f   :  { %v74_v39 = vpop.xlane.xlu0 %73  ;;  %v81_v41 = vadd.f32 %v77_v38, %v65_v31  ;;  %v408_v31 = vld [vmem:[%s668_s3] ss:$0 sm:$0xff] }
  0xa0   :  { %v80_v42 = vadd.f32 %v74_v39, %v62_v32  ;;  %v98_v44 = vsel %vm53_vm0, %v92_v37, 0.0  ;;  %v118_v47 = vsel %vm53_vm0, %v112_v40, 0.0 }
  0xa1   :  { %116 = vadd.xlane.f32.xlu0 %v115_v43  ;;  %99 = vadd.xlane.f32.xlu1 %v98_v44  ;;  %v86_v45 = vmul.f32 0.015625, %v81_v41 }
  0xa2   :  { %v85_v46 = vmul.f32 0.015625, %v80_v42 }
  0xa3   :  { %v560_v48 = vsub.f32 %v429_v11, %v86_v45  ;;  %v562_v49 = vsub.f32 %v437_v16, %v86_v45 }
  0xa4   :  { %v564_v50 = vsub.f32 %v428_v12, %v85_v46  ;;  %v566_v51 = vsub.f32 %v436_v17, %v85_v46 }
  0xa5   :  { %119 = vadd.xlane.f32.xlu1 %v118_v47  ;;  %v94_v52 = vmul.f32 %v560_v48, %v560_v48  ;;  %v114_v56 = vmul.f32 %v562_v49, %v562_v49 }
  0xa6   :  { %v93_v53 = vmul.f32 %v564_v50, %v564_v50  ;;  %v113_v57 = vmul.f32 %v566_v51, %v566_v51 }
  0xa7   :  { %v104_v54 = vsel %vm53_vm0, %v94_v52, 0.0  ;;  %v124_v58 = vsel %vm53_vm0, %v114_v56, 0.0 }
  0xa8   :  { %v101_v55 = vsel %vm53_vm0, %v93_v53, 0.0  ;;  %v121_v59 = vsel %vm53_vm0, %v113_v57, 0.0 }
  0xa9   :  { %105 = vadd.xlane.f32.xlu1 %v104_v54  ;;  %102 = vadd.xlane.f32.xlu0 %v101_v55 }
  0xad   :  { %125 = vadd.xlane.f32.xlu1 %v124_v58  ;;  %122 = vadd.xlane.f32.xlu0 %v121_v59 }
 0x12a   :  { %v97_v5 = vpop.xlane.xlu0 %96 }
 0x12e   :  { %v100_v6 = vpop.xlane.xlu1 %99  ;;  %v117_v7 = vpop.xlane.xlu0 %116 }
 0x12f   :  { %v127_v8 = vadd.f32 %v117_v7, %v97_v5  ;;  %v374_v5 = vld [vmem:[%s671_s8] sm:$0x3] }
 0x131   :  { %v131_v9 = vmul.f32 0.015625, %v127_v8 }
 0x132   :  { %v120_v10 = vpop.xlane.xlu1 %119 }
 0x133   :  { %v135_v11 = vadd.f32 1e-12, %v131_v9  ;;  %v128_v12 = vadd.f32 %v120_v10, %v100_v6 }
 0x135   :  { %461 = vrsqrt.f32 %v135_v11  ;;  %v132_v13 = vmul.f32 0.015625, %v128_v12 }
 0x136   :  { %v106_v14 = vpop.xlane.xlu1 %105  ;;  %v103_v15 = vpop.xlane.xlu0 %102 }
 0x137   :  { %v136_v16 = vadd.f32 1e-12, %v132_v13 }
 0x139   :  { %463 = vrsqrt.f32 %v136_v16 }
 0x13a   :  { %v126_v17 = vpop.xlane.xlu1 %125  ;;  %v123_v18 = vpop.xlane.xlu0 %122 }
 0x13b   :  { %v130_v19 = vadd.f32 %v126_v17, %v106_v14  ;;  %v129_v20 = vadd.f32 %v123_v18, %v103_v15 }
 0x13d   :  { %v134_v21 = vmul.f32 0.015625, %v130_v19  ;;  %v133_v22 = vmul.f32 0.015625, %v129_v20 }
 0x13f   :  { %v462_v23 = vpop.eup %461  ;;  %v138_v24 = vadd.f32 1e-12, %v134_v21  ;;  %v137_v25 = vadd.f32 1e-12, %v133_v22 }
 0x140   :  { %v143_v28 = vmul.f32 %v462_v23, %v540_v26  ;;  %v173_v29 = vmul.f32 %v462_v23, %v542_v27  ;;  %v407_v26 = vld [vmem:[%s669_s4] ss:$0 sm:$0xff] }
 0x141   :  { %465 = vrsqrt.f32 %v138_v24  ;;  %v409_v27 = vld [vmem:[%s670_s5] ss:$0 sm:$0xff] }
 0x142   :  { %467 = vrsqrt.f32 %v137_v25  ;;  %v154_v35 = vmul.f32 %v406_v30, %v143_v28  ;;  %v184_v36 = vmul.f32 %v408_v31, %v173_v29 }
 0x143   :  { %v464_v32 = vpop.eup %463 }
 0x144   :  { %v144_v37 = vmul.f32 %v464_v32, %v546_v33  ;;  %v174_v38 = vmul.f32 %v464_v32, %v548_v34  ;;  %v165_v41 = vadd.f32 %v407_v26, %v154_v35  ;;  %v195_v42 = vadd.f32 %v409_v27, %v184_v36 }
 0x146   :  { %v155_v39 = vmul.f32 %v406_v30, %v144_v37  ;;  %v185_v40 = vmul.f32 %v408_v31, %v174_v38 }
 0x148   :  { %v166_v43 = vadd.f32 %v407_v26, %v155_v39  ;;  %v196_v44 = vadd.f32 %v409_v27, %v185_v40 }
 0x14a   :  { %v169_v45 = vpack.c.bf16 %v166_v43, %v165_v41  ;;  %v199_v46 = vpack.c.bf16 %v196_v44, %v195_v42 }
 0x14b   :  { %v466_v47 = vpop.eup %465 }
 0x14c   :  { %v468_v33 = vpop.eup %467  ;;  %171 = vst.msk [vmem:[#allocation2] sm:$0xff] %vm53_vm0, %v169_v45  ;;  %201 = vst.msk [vmem:[#allocation3] sm:$0xff] %vm53_vm0, %v199_v46  ;;  %v146_v34 = vmul.f32 %v466_v47, %v560_v48  ;;  %v176_v52 = vmul.f32 %v466_v47, %v562_v49 }
 0x14d   :  { %v145_v53 = vmul.f32 %v468_v33, %v564_v50  ;;  %v175_v54 = vmul.f32 %v468_v33, %v566_v51  ;;  %v376_v50 = vlaneseq }
 0x14e   :  { %v157_v55 = vmul.f32 %v406_v30, %v146_v34  ;;  %v187_v56 = vmul.f32 %v408_v31, %v176_v52 }
 0x14f   :  { %v156_v57 = vmul.f32 %v406_v30, %v145_v53  ;;  %v186_v58 = vmul.f32 %v408_v31, %v175_v54  ;;  %v377_v51 = vshrl.u32 %v376_v50, 7 }
 0x150   :  { %v168_v59 = vadd.f32 %v407_v26, %v157_v55  ;;  %v198_v60 = vadd.f32 %v409_v27, %v187_v56 }
 0x151   :  { %v167_v61 = vadd.f32 %v407_v26, %v156_v57  ;;  %v197_v62 = vadd.f32 %v409_v27, %v186_v58  ;;  %v378_v3 = vsub.s32 0, %v377_v51  ;;  %v382_v6 = vsub.s32 1, %v377_v51 }
 0x153   :  { %v170_v63 = vpack.c.bf16 %v168_v59, %v167_v61  ;;  %v200_v0 = vpack.c.bf16 %v198_v60, %v197_v62  ;;  %v209_v1 = vld [vmem:[#allocation3] sm:$0xff]  ;;  %v203_v2 = vld [vmem:[#allocation2] sm:$0xff]  ;;  %v379_v7 = vrot.slane %v374_v5, %v378_v3  ;;  %v383_v10 = vrot.slane %v374_v5, %v382_v6 }
 0x154   :  { %414 = vmatmul.mubr.msk.bf16.vlgmr.msra.gmra.mrb[0].mxu1 %vm53_vm0, %v209_v1  ;;  %420 = vmatmul.mubr.msk.bf16.vlgmr.msra.gmra.mrb[0].mxu0 %vm53_vm0, %v203_v2 }
 0x155   :  { %172 = vst.msk [vmem:[#allocation2 + $0x8] sm:$0xff] %vm53_vm0, %v170_v63  ;;  %202 = vst.msk [vmem:[#allocation3 + $0x8] sm:$0xff] %vm53_vm0, %v200_v0  ;;  %284 = vmatprep.mubr.bf16.mxu1 %v469_v4  ;;  %363 = vmatprep.mubr.bf16.mxu0 %v469_v4 }
 0x15c   :  { %v210_v48 = vld [vmem:[#allocation3 + $0x8] sm:$0xff]  ;;  %v204_v49 = vld [vmem:[#allocation2 + $0x8] sm:$0xff] }
 0x15d   :  { %415 = vmatmul.mubr.msk.bf16.gmra.mrb[4].mxu1 %vm53_vm0, %v210_v48  ;;  %421 = vmatmul.mubr.msk.bf16.gmra.mrb[4].mxu0 %vm53_vm0, %v204_v49 }
 0x227   :  { %v276_v8 = vpop.f32.mrb[0].mxu1  ;;  %v355_v9 = vpop.f32.mrb[0].mxu0 }
 0x228   :  { %v356_v11 = vadd.f32 %v355_v9, %v276_v8  ;;  %v278_v4 = vpop.f32.mrb[1].mxu1  ;;  %v357_v12 = vpop.f32.mrb[1].mxu0 }
 0x229   :  { %v358_v13 = vadd.f32 %v357_v12, %v278_v4  ;;  %v280_v14 = vpop.f32.mrb[2].mxu1  ;;  %v359_v15 = vpop.f32.mrb[2].mxu0 }
 0x22a   :  { %v386_v16 = vadd.f32 %v379_v7, %v356_v11  ;;  %v360_v17 = vadd.f32 %v359_v15, %v280_v14  ;;  %v282_v18 = vpop.f32.mrb[3].mxu1  ;;  %v361_v19 = vpop.f32.mrb[3].mxu0 }
 0x22b   :  { %v387_v20 = vadd.f32 %v383_v10, %v358_v13  ;;  %v362_v21 = vadd.f32 %v361_v19, %v282_v18 }
 0x22c   :  { %394 = vst [vmem:[%s672_s9] sm:$0xff] %v386_v16  ;;  %v388_v22 = vadd.f32 %v379_v7, %v360_v17 }
 0x22d   :  { %395 = vst [vmem:[%s672_s9 + $0x8] sm:$0xff] %v387_v20  ;;  %v389_v23 = vadd.f32 %v383_v10, %v362_v21 }
 0x22e   :  { %396 = vst [vmem:[%s672_s9 + $0x10] sm:$0xff] %v388_v22 }
 0x22f   :  { %397 = vst [vmem:[%s672_s9 + $0x18] sm:$0xff] %v389_v23 }
 0x230   :  { %v286_v24 = vpop.f32.mrb[4].mxu1  ;;  %v365_v25 = vpop.f32.mrb[4].mxu0 }
 0x231   :  { %v366_v28 = vadd.f32 %v365_v25, %v286_v24  ;;  %v288_v29 = vpop.f32.mrb[5].mxu1  ;;  %v367_v30 = vpop.f32.mrb[5].mxu0 }
 0x232   :  { %v368_v31 = vadd.f32 %v367_v30, %v288_v29  ;;  %v290_v32 = vpop.f32.mrb[6].mxu1  ;;  %v369_v35 = vpop.f32.mrb[6].mxu0 }
 0x233   :  { %v390_v36 = vadd.f32 %v379_v7, %v366_v28  ;;  %v370_v37 = vadd.f32 %v369_v35, %v290_v32  ;;  %v292_v38 = vpop.f32.mrb[7].mxu1  ;;  %v371_v26 = vpop.f32.mrb[7].mxu0 }
 0x234   :  { %v391_v27 = vadd.f32 %v383_v10, %v368_v31  ;;  %v372_v39 = vadd.f32 %v371_v26, %v292_v38 }
 0x235   :  { %398 = vst [vmem:[%s672_s9 + $0x20] sm:$0xff] %v390_v36  ;;  %v392_v40 = vadd.f32 %v379_v7, %v370_v37 }
 0x236   :  { %399 = vst [vmem:[%s672_s9 + $0x28] sm:$0xff] %v391_v27  ;;  %v393_v41 = vadd.f32 %v383_v10, %v372_v39 }
 0x237   :  { %400 = vst [vmem:[%s672_s9 + $0x30] sm:$0xff] %v392_v40 }
 0x238   :  { %401 = vst [vmem:[%s672_s9 + $0x38] sm:$0xff] %v393_v41 }

</bundles_post_ra>
